<compile_context>
chip_gen: v5e
topology: v5e:2x2
jax: 0.10.0
libtpu: 0.0.40
codegen_flags: <defaults>
</compile_context>

<pallas_src>
import functools

import numpy as np
import jax
import jax.numpy as jnp
from jax import lax
from jax.experimental import pallas as pl
from jax.experimental.pallas import tpu as pltpu


def _shift_flat(m, shift):
    """m has flattened spatial on the lane axis; returns t[:, s] = m[:, (s - shift) % S]."""
    if shift == 0:
        return m
    return pltpu.roll(m, shift, 1)


def _fused_up_block_kernel(
    pixidx_ref,            # (4, S) int32 rows: [y, x, y % u, x % u] of the flat full-res index
    xnn_ref,               # (1, Cin, S)  nearest-neighbour-replicated low-res input
    skip_ref,              # (1, Cout, S) skip connection
    wt_ref,                # (u*u, Cout, Cin)  transp-conv weight per output phase (dh*u+dw)
    w1u_ref,               # (k*k, Cout, Cout) conv1 weight, up-path channels, per tap (kh*k+kw)
    w1s_ref,               # (k*k, Cout, Cout) conv1 weight, skip-path channels
    w2_ref,                # (k*k, Cout, Cout) conv2 weight
    g1_ref, b1_ref, g2_ref, b2_ref,  # (Cout, 1) instance-norm affine (identity if non-affine)
    o_ref,                 # (1, Cout, S)
    up_ref, h_ref, acc_ref,          # VMEM scratch, (Cout, S) f32 each
    *, u, k, p, Hu, Wu,
):
    S = o_ref.shape[2]
    Cout = o_ref.shape[1]

    idx = pixidx_ref[...]
    yy = idx[0:1, :]       # (1, S) row index
    xx = idx[1:2, :]       # (1, S) col index
    ymu = idx[2:3, :]      # (1, S) row index mod u
    xmu = idx[3:4, :]      # (1, S) col index mod u

    # ---- transposed conv (kernel == stride == u, pad 0): phase-selected matmuls ----------
    # up[c, Y, X] = sum_ci Wt[ci, c, Y%u, X%u] * x[ci, Y//u, X//u]
    xin = xnn_ref[0].astype(jnp.float32)            # (Cin, S), x_nn[ci, s] = x[ci, Y//u, X//u]
    up = jnp.zeros((Cout, S), jnp.float32)
    for dh in range(u):
        for dw in range(u):
            pm = ((ymu == dh) & (xmu == dw)).astype(jnp.float32)            # (1, S)
            up = up + pm * jnp.dot(wt_ref[dh * u + dw], xin,
                                   preferred_element_type=jnp.float32)
    up_ref[...] = up

    skip = skip_ref[0].astype(jnp.float32)          # (Cout, S)

    # ---- per-tap shift amounts and boundary masks (shared by conv1 / conv2) --------------
    shifts = []
    masks = []
    for kh in range(k):
        for kw in range(k):
            dy, dx = kh - p, kw - p
            delta = dy * Wu + dx                    # flat-index offset of the source pixel
            shifts.append((-delta) % S)             # np.roll convention: out[s] = in[s+delta]
            ok = ((yy + dy >= 0) & (yy + dy < Hu) &
                  (xx + dx >= 0) & (xx + dx < Wu))
            masks.append(ok.astype(jnp.float32))    # (1, S)

    # ---- conv1 over the (virtual) concat [up, skip] + InstanceNorm + LeakyReLU -----------
    acc_ref[...] = jnp.zeros((Cout, S), jnp.float32)
    for t in range(k * k):
        m = masks[t]
        ru = _shift_flat(up_ref[...], shifts[t]) * m     # up  map shifted by (dy, dx), zero-pad
        rs = _shift_flat(skip, shifts[t]) * m            # skip map shifted by (dy, dx), zero-pad
        acc_ref[...] += (
            jnp.dot(w1u_ref[t], ru, preferred_element_type=jnp.float32)
            + jnp.dot(w1s_ref[t], rs, preferred_element_type=jnp.float32))

    a1 = acc_ref[...]
    mu1 = jnp.mean(a1, axis=1, keepdims=True)                     # per-channel mean over H*W
    var1 = jnp.mean((a1 - mu1) ** 2, axis=1, keepdims=True)       # biased variance
    y1 = (a1 - mu1) * lax.rsqrt(var1 + 1e-5)
    y1 = y1 * g1_ref[...] + b1_ref[...]
    h_ref[...] = jnp.where(y1 >= 0.0, y1, 0.01 * y1)              # LeakyReLU(0.01)

    # ---- conv2 + InstanceNorm + LeakyReLU --------------------------------------------------
    acc_ref[...] = jnp.zeros((Cout, S), jnp.float32)
    for t in range(k * k):
        rh = _shift_flat(h_ref[...], shifts[t]) * masks[t]
        acc_ref[...] += jnp.dot(w2_ref[t], rh, preferred_element_type=jnp.float32)

    a2 = acc_ref[...]
    mu2 = jnp.mean(a2, axis=1, keepdims=True)
    var2 = jnp.mean((a2 - mu2) ** 2, axis=1, keepdims=True)
    y2 = (a2 - mu2) * lax.rsqrt(var2 + 1e-5)
    y2 = y2 * g2_ref[...] + b2_ref[...]
    o_ref[0] = jnp.where(y2 >= 0.0, y2, 0.01 * y2).astype(o_ref.dtype)


def unet_up_block_forward(inp, skip, params):
    """UnetUpBlock forward. inp: (N, Cin, H, W), skip: (N, Cout, H*u, W*u) — NCHW like PyTorch."""
    N, Cin, H, W = inp.shape
    Nc, Cout, Hu, Wu = skip.shape
    wt = params["transp_w"]                 # (Cin, Cout, u, u)   torch ConvTranspose2d layout
    w1 = params["conv1_w"]                  # (Cout, 2*Cout, k, k) torch OIHW
    w2 = params["conv2_w"]                  # (Cout, Cout, k, k)   torch OIHW
    u = wt.shape[2]
    k = w1.shape[2]
    p = k // 2                              # get_padding(k, 1)
    assert Nc == N and Hu == H * u and Wu == W * u
    S = Hu * Wu

    # --- one-time weight / param rearrangement (tiny) ---
    wt_planes = jnp.transpose(wt, (2, 3, 1, 0)).reshape(u * u, Cout, Cin)      # [dh*u+dw, co, ci]
    w1u = jnp.transpose(w1[:, :Cout], (2, 3, 0, 1)).reshape(k * k, Cout, Cout)  # up-path half
    w1s = jnp.transpose(w1[:, Cout:], (2, 3, 0, 1)).reshape(k * k, Cout, Cout)  # skip-path half
    w2t = jnp.transpose(w2, (2, 3, 0, 1)).reshape(k * k, Cout, Cout)
    g1 = params["g1"].reshape(Cout, 1).astype(jnp.float32)
    b1 = params["b1"].reshape(Cout, 1).astype(jnp.float32)
    g2 = params["g2"].reshape(Cout, 1).astype(jnp.float32)
    b2 = params["b2"].reshape(Cout, 1).astype(jnp.float32)

    # --- static per-pixel index table in the flattened full-res lane space ---
    s = np.arange(S, dtype=np.int32)
    yv, xv = s // Wu, s % Wu
    pixidx = jnp.asarray(np.stack([yv, xv, yv % u, xv % u]), jnp.int32)        # (4, S)

    # Nearest-neighbour pixel replication of the low-res input: the transp-conv with
    # kernel == stride only ever reads x[:, Y//u, X//u]; the per-phase weight selection
    # happens inside the kernel.  This single tensor replaces the previously materialized
    # up / concat / inter-stage intermediates and all boundary transposes.
    x_nn = jnp.repeat(jnp.repeat(inp, u, axis=2), u, axis=3).reshape(N, Cin, S)
    skip2 = skip.reshape(N, Cout, S)

    kern = functools.partial(_fused_up_block_kernel, u=u, k=k, p=p, Hu=Hu, Wu=Wu)

    out2 = pl.pallas_call(
        kern,
        out_shape=jax.ShapeDtypeStruct((N, Cout, S), skip.dtype),
        grid=(N,),
        in_specs=[
            pl.BlockSpec((4, S), lambda n: (0, 0)),                      # pixidx (fetched once)
            pl.BlockSpec((1, Cin, S), lambda n: (n, 0, 0)),              # x_nn
            pl.BlockSpec((1, Cout, S), lambda n: (n, 0, 0)),             # skip
            pl.BlockSpec((u * u, Cout, Cin), lambda n: (0, 0, 0)),       # transp-conv weight
            pl.BlockSpec((k * k, Cout, Cout), lambda n: (0, 0, 0)),      # conv1 (up half)
            pl.BlockSpec((k * k, Cout, Cout), lambda n: (0, 0, 0)),      # conv1 (skip half)
            pl.BlockSpec((k * k, Cout, Cout), lambda n: (0, 0, 0)),      # conv2
            pl.BlockSpec((Cout, 1), lambda n: (0, 0)),                   # gamma1
            pl.BlockSpec((Cout, 1), lambda n: (0, 0)),                   # beta1
            pl.BlockSpec((Cout, 1), lambda n: (0, 0)),                   # gamma2
            pl.BlockSpec((Cout, 1), lambda n: (0, 0)),                   # beta2
        ],
        out_specs=pl.BlockSpec((1, Cout, S), lambda n: (n, 0, 0)),
        scratch_shapes=[
            pltpu.VMEM((Cout, S), jnp.float32),   # up
            pltpu.VMEM((Cout, S), jnp.float32),   # stage-1 activation
            pltpu.VMEM((Cout, S), jnp.float32),   # conv accumulator (reused by both stages)
        ],
        compiler_params=pltpu.CompilerParams(
            dimension_semantics=("parallel",),
            vmem_limit_bytes=48 * 1024 * 1024,
        ),
    )(pixidx, x_nn, skip2, wt_planes, w1u, w1s, w2t, g1, b1, g2, b2)

    return out2.reshape(N, Cout, Hu, Wu)


def _reference_forward(inp, skip, params):
    """Pure-JAX (XLA) reference, numerically equivalent to the PyTorch module."""
    N, Cin, H, W = inp.shape
    Cout = skip.shape[1]
    wt = params["transp_w"]
    u = wt.shape[2]
    w1, w2 = params["conv1_w"], params["conv2_w"]
    k = w1.shape[2]
    p = k // 2
    hi = lax.Precision.HIGHEST
    # ConvTranspose2d with kernel == stride == u, padding 0, no bias.
    t = jnp.einsum("nchw,cdab->ndhawb", inp, wt, precision=hi)
    up = t.reshape(N, Cout, H * u, W * u)
    cat = jnp.concatenate([up, skip], axis=1)
    dn = ("NCHW", "OIHW", "NCHW")

    def conv_in_lrelu(x, w, g, b):
        y = lax.conv_general_dilated(x, w, (1, 1), [(p, p), (p, p)],
                                     dimension_numbers=dn, precision=hi)
        mu = jnp.mean(y, axis=(2, 3), keepdims=True)
        var = jnp.mean((y - mu) ** 2, axis=(2, 3), keepdims=True)
        y = (y - mu) * lax.rsqrt(var + 1e-5)
        y = y * g.reshape(1, -1, 1, 1) + b.reshape(1, -1, 1, 1)
        return jnp.where(y >= 0, y, 0.01 * y)

    h = conv_in_lrelu(cat, w1, params["g1"], params["b1"])
    return conv_in_lrelu(h, w2, params["g2"], params["b2"])


if __name__ == "__main__":
    key = jax.random.PRNGKey(0)
    N, Cin, Cout = 2, 8, 4
    H = W = 8            # low-res input spatial size
    u = 2                # upsample_kernel_size == upsample stride
    k = 3                # conv kernel size

    ks = jax.random.split(key, 5)
    inp = jax.random.normal(ks[0], (N, Cin, H, W), jnp.float32)
    skip = jax.random.normal(ks[1], (N, Cout, H * u, W * u), jnp.float32)

    transp_w = 0.1 * jax.random.normal(ks[2], (Cin, Cout, u, u), jnp.float32)   # (in, out, u, u)
    conv1_w = 0.1 * jax.random.normal(ks[3], (Cout, 2 * Cout, k, k), jnp.float32)  # OIHW
    conv2_w = 0.1 * jax.random.normal(ks[4], (Cout, Cout, k, k), jnp.float32)      # OIHW

    params = dict(
        transp_w=transp_w,
        conv1_w=conv1_w,
        conv2_w=conv2_w,
        # MONAI's default "instance" norm is non-affine -> identity scale/shift.
        # (If configured affine=True, plug the learned gamma/beta in here.)
        g1=jnp.ones((Cout,), jnp.float32), b1=jnp.zeros((Cout,), jnp.float32),
        g2=jnp.ones((Cout,), jnp.float32), b2=jnp.zeros((Cout,), jnp.float32),
    )

    out = jax.jit(unet_up_block_forward)(inp, skip, params)
    jax.block_until_ready(out)

    assert out.shape == (N, Cout, H * u, W * u), out.shape
    assert out.dtype == jnp.float32

    ref = jax.jit(_reference_forward)(inp, skip, params)
    jax.block_until_ready(ref)
    np.testing.assert_allclose(np.asarray(out), np.asarray(ref), rtol=2e-2, atol=2e-2)

    print("KERNEL_OK")
</pallas_src>

<mosaic_0001>
module attributes {stable_mosaic.version = 11 : i64} {
  func.func @_fused_up_block_kernel(%arg0: i32, %arg1: memref<4x256xi32, #tpu.memory_space<vmem>>, %arg2: memref<1x8x256xf32, #tpu.memory_space<vmem>>, %arg3: memref<1x4x256xf32, #tpu.memory_space<vmem>>, %arg4: memref<4x4x8xf32, #tpu.memory_space<vmem>>, %arg5: memref<9x4x4xf32, #tpu.memory_space<vmem>>, %arg6: memref<9x4x4xf32, #tpu.memory_space<vmem>>, %arg7: memref<9x4x4xf32, #tpu.memory_space<vmem>>, %arg8: memref<4x1xf32, #tpu.memory_space<vmem>>, %arg9: memref<4x1xf32, #tpu.memory_space<vmem>>, %arg10: memref<4x1xf32, #tpu.memory_space<vmem>>, %arg11: memref<4x1xf32, #tpu.memory_space<vmem>>, %arg12: memref<1x4x256xf32, #tpu.memory_space<vmem>>, %arg13: memref<4x256xf32, #tpu.memory_space<vmem>>, %arg14: memref<4x256xf32, #tpu.memory_space<vmem>>, %arg15: memref<4x256xf32, #tpu.memory_space<vmem>>) attributes {dimension_semantics = [#tpu.dimension_semantics<parallel>], iteration_bounds = array<i64: 2>, scalar_prefetch = 0 : i64, scratch_operands = 3 : i64, tpu.core_type = #tpu.core_type<tc>, window_params = [{pipeline_mode = #tpu.pipeline_mode<synchronous>, transform_indices = @transform_0, window_bounds = array<i64: 4, 256>}, {transform_indices = @transform_1, window_bounds = array<i64: 1, 8, 256>}, {transform_indices = @transform_2, window_bounds = array<i64: 1, 4, 256>}, {pipeline_mode = #tpu.pipeline_mode<synchronous>, transform_indices = @transform_3, window_bounds = array<i64: 4, 4, 8>}, {pipeline_mode = #tpu.pipeline_mode<synchronous>, transform_indices = @transform_4, window_bounds = array<i64: 9, 4, 4>}, {pipeline_mode = #tpu.pipeline_mode<synchronous>, transform_indices = @transform_5, window_bounds = array<i64: 9, 4, 4>}, {pipeline_mode = #tpu.pipeline_mode<synchronous>, transform_indices = @transform_6, window_bounds = array<i64: 9, 4, 4>}, {pipeline_mode = #tpu.pipeline_mode<synchronous>, transform_indices = @transform_7, window_bounds = array<i64: 4, 1>}, {pipeline_mode = #tpu.pipeline_mode<synchronous>, transform_indices = @transform_8, window_bounds = array<i64: 4, 1>}, {pipeline_mode = #tpu.pipeline_mode<synchronous>, transform_indices = @transform_9, window_bounds = array<i64: 4, 1>}, {pipeline_mode = #tpu.pipeline_mode<synchronous>, transform_indices = @transform_10, window_bounds = array<i64: 4, 1>}, {transform_indices = @transform_11, window_bounds = array<i64: 1, 4, 256>}]} {
    %c0 = arith.constant 0 : index
    %c0_0 = arith.constant 0 : index
    %0 = vector.load %arg1[%c0, %c0_0] : memref<4x256xi32, #tpu.memory_space<vmem>>, vector<4x256xi32>
    %1 = vector.extract_strided_slice %0 {offsets = [0, 0], sizes = [1, 256], strides = [1, 1]} : vector<4x256xi32> to vector<1x256xi32>
    %2 = vector.extract_strided_slice %0 {offsets = [1, 0], sizes = [1, 256], strides = [1, 1]} : vector<4x256xi32> to vector<1x256xi32>
    %3 = vector.extract_strided_slice %0 {offsets = [2, 0], sizes = [1, 256], strides = [1, 1]} : vector<4x256xi32> to vector<1x256xi32>
    %4 = vector.extract_strided_slice %0 {offsets = [3, 0], sizes = [1, 256], strides = [1, 1]} : vector<4x256xi32> to vector<1x256xi32>
    %c0_1 = arith.constant 0 : index
    %c0_2 = arith.constant 0 : index
    %c0_3 = arith.constant 0 : index
    %5 = vector.load %arg2[%c0_1, %c0_2, %c0_3] : memref<1x8x256xf32, #tpu.memory_space<vmem>>, vector<1x8x256xf32>
    %6 = vector.shape_cast %5 : vector<1x8x256xf32> to vector<8x256xf32>
    %cst = arith.constant 0.000000e+00 : f32
    %7 = vector.broadcast %cst : f32 to vector<4x256xf32>
    %c0_i32 = arith.constant 0 : i32
    %8 = vector.broadcast %c0_i32 : i32 to vector<1x256xi32>
    %9 = arith.cmpi eq, %3, %8 : vector<1x256xi32>
    %c0_i32_4 = arith.constant 0 : i32
    %10 = vector.broadcast %c0_i32_4 : i32 to vector<1x256xi32>
    %11 = arith.cmpi eq, %4, %10 : vector<1x256xi32>
    %12 = arith.andi %9, %11 : vector<1x256xi1>
    %13 = arith.extui %12 : vector<1x256xi1> to vector<1x256xi32>
    %14 = arith.sitofp %13 : vector<1x256xi32> to vector<1x256xf32>
    %c0_5 = arith.constant 0 : index
    %c0_6 = arith.constant 0 : index
    %c0_7 = arith.constant 0 : index
    %15 = vector.load %arg4[%c0_5, %c0_6, %c0_7] : memref<4x4x8xf32, #tpu.memory_space<vmem>>, vector<1x4x8xf32>
    %16 = vector.shape_cast %15 : vector<1x4x8xf32> to vector<4x8xf32>
    %cst_8 = arith.constant dense<0.000000e+00> : vector<4x256xf32>
    %17 = tpu.matmul %16, %6, %cst_8 {dimension_numbers = #tpu.dot_dimension_numbers<[1], [0], [0], [1], [0, 0, 1, 1], [], []>} : vector<4x8xf32>, vector<8x256xf32>, vector<4x256xf32> -> vector<4x256xf32>
    %18 = vector.broadcast %14 : vector<1x256xf32> to vector<4x256xf32>
    %19 = arith.mulf %18, %17 : vector<4x256xf32>
    %20 = arith.addf %7, %19 : vector<4x256xf32>
    %c0_i32_9 = arith.constant 0 : i32
    %21 = vector.broadcast %c0_i32_9 : i32 to vector<1x256xi32>
    %22 = arith.cmpi eq, %3, %21 : vector<1x256xi32>
    %c1_i32 = arith.constant 1 : i32
    %23 = vector.broadcast %c1_i32 : i32 to vector<1x256xi32>
    %24 = arith.cmpi eq, %4, %23 : vector<1x256xi32>
    %25 = arith.andi %22, %24 : vector<1x256xi1>
    %26 = arith.extui %25 : vector<1x256xi1> to vector<1x256xi32>
    %27 = arith.sitofp %26 : vector<1x256xi32> to vector<1x256xf32>
    %c1 = arith.constant 1 : index
    %c0_10 = arith.constant 0 : index
    %c0_11 = arith.constant 0 : index
    %28 = vector.load %arg4[%c1, %c0_10, %c0_11] : memref<4x4x8xf32, #tpu.memory_space<vmem>>, vector<1x4x8xf32>
    %29 = vector.shape_cast %28 : vector<1x4x8xf32> to vector<4x8xf32>
    %cst_12 = arith.constant dense<0.000000e+00> : vector<4x256xf32>
    %30 = tpu.matmul %29, %6, %cst_12 {dimension_numbers = #tpu.dot_dimension_numbers<[1], [0], [0], [1], [0, 0, 1, 1], [], []>} : vector<4x8xf32>, vector<8x256xf32>, vector<4x256xf32> -> vector<4x256xf32>
    %31 = vector.broadcast %27 : vector<1x256xf32> to vector<4x256xf32>
    %32 = arith.mulf %31, %30 : vector<4x256xf32>
    %33 = arith.addf %20, %32 : vector<4x256xf32>
    %c1_i32_13 = arith.constant 1 : i32
    %34 = vector.broadcast %c1_i32_13 : i32 to vector<1x256xi32>
    %35 = arith.cmpi eq, %3, %34 : vector<1x256xi32>
    %c0_i32_14 = arith.constant 0 : i32
    %36 = vector.broadcast %c0_i32_14 : i32 to vector<1x256xi32>
    %37 = arith.cmpi eq, %4, %36 : vector<1x256xi32>
    %38 = arith.andi %35, %37 : vector<1x256xi1>
    %39 = arith.extui %38 : vector<1x256xi1> to vector<1x256xi32>
    %40 = arith.sitofp %39 : vector<1x256xi32> to vector<1x256xf32>
    %c2 = arith.constant 2 : index
    %c0_15 = arith.constant 0 : index
    %c0_16 = arith.constant 0 : index
    %41 = vector.load %arg4[%c2, %c0_15, %c0_16] : memref<4x4x8xf32, #tpu.memory_space<vmem>>, vector<1x4x8xf32>
    %42 = vector.shape_cast %41 : vector<1x4x8xf32> to vector<4x8xf32>
    %cst_17 = arith.constant dense<0.000000e+00> : vector<4x256xf32>
    %43 = tpu.matmul %42, %6, %cst_17 {dimension_numbers = #tpu.dot_dimension_numbers<[1], [0], [0], [1], [0, 0, 1, 1], [], []>} : vector<4x8xf32>, vector<8x256xf32>, vector<4x256xf32> -> vector<4x256xf32>
    %44 = vector.broadcast %40 : vector<1x256xf32> to vector<4x256xf32>
    %45 = arith.mulf %44, %43 : vector<4x256xf32>
    %46 = arith.addf %33, %45 : vector<4x256xf32>
    %c1_i32_18 = arith.constant 1 : i32
    %47 = vector.broadcast %c1_i32_18 : i32 to vector<1x256xi32>
    %48 = arith.cmpi eq, %3, %47 : vector<1x256xi32>
    %c1_i32_19 = arith.constant 1 : i32
    %49 = vector.broadcast %c1_i32_19 : i32 to vector<1x256xi32>
    %50 = arith.cmpi eq, %4, %49 : vector<1x256xi32>
    %51 = arith.andi %48, %50 : vector<1x256xi1>
    %52 = arith.extui %51 : vector<1x256xi1> to vector<1x256xi32>
    %53 = arith.sitofp %52 : vector<1x256xi32> to vector<1x256xf32>
    %c3 = arith.constant 3 : index
    %c0_20 = arith.constant 0 : index
    %c0_21 = arith.constant 0 : index
    %54 = vector.load %arg4[%c3, %c0_20, %c0_21] : memref<4x4x8xf32, #tpu.memory_space<vmem>>, vector<1x4x8xf32>
    %55 = vector.shape_cast %54 : vector<1x4x8xf32> to vector<4x8xf32>
    %cst_22 = arith.constant dense<0.000000e+00> : vector<4x256xf32>
    %56 = tpu.matmul %55, %6, %cst_22 {dimension_numbers = #tpu.dot_dimension_numbers<[1], [0], [0], [1], [0, 0, 1, 1], [], []>} : vector<4x8xf32>, vector<8x256xf32>, vector<4x256xf32> -> vector<4x256xf32>
    %57 = vector.broadcast %53 : vector<1x256xf32> to vector<4x256xf32>
    %58 = arith.mulf %57, %56 : vector<4x256xf32>
    %59 = arith.addf %46, %58 : vector<4x256xf32>
    %c0_23 = arith.constant 0 : index
    %c0_24 = arith.constant 0 : index
    %60 = vector.load %arg13[%c0_23, %c0_24] : memref<4x256xf32, #tpu.memory_space<vmem>>, vector<4x256xf32>
    tpu.vector_store %arg13[%c0_23, %c0_24], %59 {strides = array<i32>} : memref<4x256xf32, #tpu.memory_space<vmem>>, vector<4x256xf32>,
    %c0_25 = arith.constant 0 : index
    %c0_26 = arith.constant 0 : index
    %c0_27 = arith.constant 0 : index
    %61 = vector.load %arg3[%c0_25, %c0_26, %c0_27] : memref<1x4x256xf32, #tpu.memory_space<vmem>>, vector<1x4x256xf32>
    %62 = vector.shape_cast %61 : vector<1x4x256xf32> to vector<4x256xf32>
    %c-1_i32 = arith.constant -1 : i32
    %63 = vector.broadcast %c-1_i32 : i32 to vector<1x256xi32>
    %64 = arith.addi %1, %63 : vector<1x256xi32>
    %c0_i32_28 = arith.constant 0 : i32
    %65 = vector.broadcast %c0_i32_28 : i32 to vector<1x256xi32>
    %66 = arith.cmpi sge, %64, %65 : vector<1x256xi32>
    %c-1_i32_29 = arith.constant -1 : i32
    %67 = vector.broadcast %c-1_i32_29 : i32 to vector<1x256xi32>
    %68 = arith.addi %1, %67 : vector<1x256xi32>
    %c16_i32 = arith.constant 16 : i32
    %69 = vector.broadcast %c16_i32 : i32 to vector<1x256xi32>
    %70 = arith.cmpi slt, %68, %69 : vector<1x256xi32>
    %71 = arith.andi %66, %70 : vector<1x256xi1>
    %c-1_i32_30 = arith.constant -1 : i32
    %72 = vector.broadcast %c-1_i32_30 : i32 to vector<1x256xi32>
    %73 = arith.addi %2, %72 : vector<1x256xi32>
    %c0_i32_31 = arith.constant 0 : i32
    %74 = vector.broadcast %c0_i32_31 : i32 to vector<1x256xi32>
    %75 = arith.cmpi sge, %73, %74 : vector<1x256xi32>
    %76 = arith.andi %71, %75 : vector<1x256xi1>
    %c-1_i32_32 = arith.constant -1 : i32
    %77 = vector.broadcast %c-1_i32_32 : i32 to vector<1x256xi32>
    %78 = arith.addi %2, %77 : vector<1x256xi32>
    %c16_i32_33 = arith.constant 16 : i32
    %79 = vector.broadcast %c16_i32_33 : i32 to vector<1x256xi32>
    %80 = arith.cmpi slt, %78, %79 : vector<1x256xi32>
    %81 = arith.andi %76, %80 : vector<1x256xi1>
    %82 = arith.extui %81 : vector<1x256xi1> to vector<1x256xi32>
    %83 = arith.sitofp %82 : vector<1x256xi32> to vector<1x256xf32>
    %c-1_i32_34 = arith.constant -1 : i32
    %84 = vector.broadcast %c-1_i32_34 : i32 to vector<1x256xi32>
    %85 = arith.addi %1, %84 : vector<1x256xi32>
    %c0_i32_35 = arith.constant 0 : i32
    %86 = vector.broadcast %c0_i32_35 : i32 to vector<1x256xi32>
    %87 = arith.cmpi sge, %85, %86 : vector<1x256xi32>
    %c-1_i32_36 = arith.constant -1 : i32
    %88 = vector.broadcast %c-1_i32_36 : i32 to vector<1x256xi32>
    %89 = arith.addi %1, %88 : vector<1x256xi32>
    %c16_i32_37 = arith.constant 16 : i32
    %90 = vector.broadcast %c16_i32_37 : i32 to vector<1x256xi32>
    %91 = arith.cmpi slt, %89, %90 : vector<1x256xi32>
    %92 = arith.andi %87, %91 : vector<1x256xi1>
    %c0_i32_38 = arith.constant 0 : i32
    %93 = vector.broadcast %c0_i32_38 : i32 to vector<1x256xi32>
    %94 = arith.addi %2, %93 : vector<1x256xi32>
    %c0_i32_39 = arith.constant 0 : i32
    %95 = vector.broadcast %c0_i32_39 : i32 to vector<1x256xi32>
    %96 = arith.cmpi sge, %94, %95 : vector<1x256xi32>
    %97 = arith.andi %92, %96 : vector<1x256xi1>
    %c0_i32_40 = arith.constant 0 : i32
    %98 = vector.broadcast %c0_i32_40 : i32 to vector<1x256xi32>
    %99 = arith.addi %2, %98 : vector<1x256xi32>
    %c16_i32_41 = arith.constant 16 : i32
    %100 = vector.broadcast %c16_i32_41 : i32 to vector<1x256xi32>
    %101 = arith.cmpi slt, %99, %100 : vector<1x256xi32>
    %102 = arith.andi %97, %101 : vector<1x256xi1>
    %103 = arith.extui %102 : vector<1x256xi1> to vector<1x256xi32>
    %104 = arith.sitofp %103 : vector<1x256xi32> to vector<1x256xf32>
    %c-1_i32_42 = arith.constant -1 : i32
    %105 = vector.broadcast %c-1_i32_42 : i32 to vector<1x256xi32>
    %106 = arith.addi %1, %105 : vector<1x256xi32>
    %c0_i32_43 = arith.constant 0 : i32
    %107 = vector.broadcast %c0_i32_43 : i32 to vector<1x256xi32>
    %108 = arith.cmpi sge, %106, %107 : vector<1x256xi32>
    %c-1_i32_44 = arith.constant -1 : i32
    %109 = vector.broadcast %c-1_i32_44 : i32 to vector<1x256xi32>
    %110 = arith.addi %1, %109 : vector<1x256xi32>
    %c16_i32_45 = arith.constant 16 : i32
    %111 = vector.broadcast %c16_i32_45 : i32 to vector<1x256xi32>
    %112 = arith.cmpi slt, %110, %111 : vector<1x256xi32>
    %113 = arith.andi %108, %112 : vector<1x256xi1>
    %c1_i32_46 = arith.constant 1 : i32
    %114 = vector.broadcast %c1_i32_46 : i32 to vector<1x256xi32>
    %115 = arith.addi %2, %114 : vector<1x256xi32>
    %c0_i32_47 = arith.constant 0 : i32
    %116 = vector.broadcast %c0_i32_47 : i32 to vector<1x256xi32>
    %117 = arith.cmpi sge, %115, %116 : vector<1x256xi32>
    %118 = arith.andi %113, %117 : vector<1x256xi1>
    %c1_i32_48 = arith.constant 1 : i32
    %119 = vector.broadcast %c1_i32_48 : i32 to vector<1x256xi32>
    %120 = arith.addi %2, %119 : vector<1x256xi32>
    %c16_i32_49 = arith.constant 16 : i32
    %121 = vector.broadcast %c16_i32_49 : i32 to vector<1x256xi32>
    %122 = arith.cmpi slt, %120, %121 : vector<1x256xi32>
    %123 = arith.andi %118, %122 : vector<1x256xi1>
    %124 = arith.extui %123 : vector<1x256xi1> to vector<1x256xi32>
    %125 = arith.sitofp %124 : vector<1x256xi32> to vector<1x256xf32>
    %c0_i32_50 = arith.constant 0 : i32
    %126 = vector.broadcast %c0_i32_50 : i32 to vector<1x256xi32>
    %127 = arith.addi %1, %126 : vector<1x256xi32>
    %c0_i32_51 = arith.constant 0 : i32
    %128 = vector.broadcast %c0_i32_51 : i32 to vector<1x256xi32>
    %129 = arith.cmpi sge, %127, %128 : vector<1x256xi32>
    %c0_i32_52 = arith.constant 0 : i32
    %130 = vector.broadcast %c0_i32_52 : i32 to vector<1x256xi32>
    %131 = arith.addi %1, %130 : vector<1x256xi32>
    %c16_i32_53 = arith.constant 16 : i32
    %132 = vector.broadcast %c16_i32_53 : i32 to vector<1x256xi32>
    %133 = arith.cmpi slt, %131, %132 : vector<1x256xi32>
    %134 = arith.andi %129, %133 : vector<1x256xi1>
    %c-1_i32_54 = arith.constant -1 : i32
    %135 = vector.broadcast %c-1_i32_54 : i32 to vector<1x256xi32>
    %136 = arith.addi %2, %135 : vector<1x256xi32>
    %c0_i32_55 = arith.constant 0 : i32
    %137 = vector.broadcast %c0_i32_55 : i32 to vector<1x256xi32>
    %138 = arith.cmpi sge, %136, %137 : vector<1x256xi32>
    %139 = arith.andi %134, %138 : vector<1x256xi1>
    %c-1_i32_56 = arith.constant -1 : i32
    %140 = vector.broadcast %c-1_i32_56 : i32 to vector<1x256xi32>
    %141 = arith.addi %2, %140 : vector<1x256xi32>
    %c16_i32_57 = arith.constant 16 : i32
    %142 = vector.broadcast %c16_i32_57 : i32 to vector<1x256xi32>
    %143 = arith.cmpi slt, %141, %142 : vector<1x256xi32>
    %144 = arith.andi %139, %143 : vector<1x256xi1>
    %145 = arith.extui %144 : vector<1x256xi1> to vector<1x256xi32>
    %146 = arith.sitofp %145 : vector<1x256xi32> to vector<1x256xf32>
    %c0_i32_58 = arith.constant 0 : i32
    %147 = vector.broadcast %c0_i32_58 : i32 to vector<1x256xi32>
    %148 = arith.addi %1, %147 : vector<1x256xi32>
    %c0_i32_59 = arith.constant 0 : i32
    %149 = vector.broadcast %c0_i32_59 : i32 to vector<1x256xi32>
    %150 = arith.cmpi sge, %148, %149 : vector<1x256xi32>
    %c0_i32_60 = arith.constant 0 : i32
    %151 = vector.broadcast %c0_i32_60 : i32 to vector<1x256xi32>
    %152 = arith.addi %1, %151 : vector<1x256xi32>
    %c16_i32_61 = arith.constant 16 : i32
    %153 = vector.broadcast %c16_i32_61 : i32 to vector<1x256xi32>
    %154 = arith.cmpi slt, %152, %153 : vector<1x256xi32>
    %155 = arith.andi %150, %154 : vector<1x256xi1>
    %c0_i32_62 = arith.constant 0 : i32
    %156 = vector.broadcast %c0_i32_62 : i32 to vector<1x256xi32>
    %157 = arith.addi %2, %156 : vector<1x256xi32>
    %c0_i32_63 = arith.constant 0 : i32
    %158 = vector.broadcast %c0_i32_63 : i32 to vector<1x256xi32>
    %159 = arith.cmpi sge, %157, %158 : vector<1x256xi32>
    %160 = arith.andi %155, %159 : vector<1x256xi1>
    %c0_i32_64 = arith.constant 0 : i32
    %161 = vector.broadcast %c0_i32_64 : i32 to vector<1x256xi32>
    %162 = arith.addi %2, %161 : vector<1x256xi32>
    %c16_i32_65 = arith.constant 16 : i32
    %163 = vector.broadcast %c16_i32_65 : i32 to vector<1x256xi32>
    %164 = arith.cmpi slt, %162, %163 : vector<1x256xi32>
    %165 = arith.andi %160, %164 : vector<1x256xi1>
    %166 = arith.extui %165 : vector<1x256xi1> to vector<1x256xi32>
    %167 = arith.sitofp %166 : vector<1x256xi32> to vector<1x256xf32>
    %c0_i32_66 = arith.constant 0 : i32
    %168 = vector.broadcast %c0_i32_66 : i32 to vector<1x256xi32>
    %169 = arith.addi %1, %168 : vector<1x256xi32>
    %c0_i32_67 = arith.constant 0 : i32
    %170 = vector.broadcast %c0_i32_67 : i32 to vector<1x256xi32>
    %171 = arith.cmpi sge, %169, %170 : vector<1x256xi32>
    %c0_i32_68 = arith.constant 0 : i32
    %172 = vector.broadcast %c0_i32_68 : i32 to vector<1x256xi32>
    %173 = arith.addi %1, %172 : vector<1x256xi32>
    %c16_i32_69 = arith.constant 16 : i32
    %174 = vector.broadcast %c16_i32_69 : i32 to vector<1x256xi32>
    %175 = arith.cmpi slt, %173, %174 : vector<1x256xi32>
    %176 = arith.andi %171, %175 : vector<1x256xi1>
    %c1_i32_70 = arith.constant 1 : i32
    %177 = vector.broadcast %c1_i32_70 : i32 to vector<1x256xi32>
    %178 = arith.addi %2, %177 : vector<1x256xi32>
    %c0_i32_71 = arith.constant 0 : i32
    %179 = vector.broadcast %c0_i32_71 : i32 to vector<1x256xi32>
    %180 = arith.cmpi sge, %178, %179 : vector<1x256xi32>
    %181 = arith.andi %176, %180 : vector<1x256xi1>
    %c1_i32_72 = arith.constant 1 : i32
    %182 = vector.broadcast %c1_i32_72 : i32 to vector<1x256xi32>
    %183 = arith.addi %2, %182 : vector<1x256xi32>
    %c16_i32_73 = arith.constant 16 : i32
    %184 = vector.broadcast %c16_i32_73 : i32 to vector<1x256xi32>
    %185 = arith.cmpi slt, %183, %184 : vector<1x256xi32>
    %186 = arith.andi %181, %185 : vector<1x256xi1>
    %187 = arith.extui %186 : vector<1x256xi1> to vector<1x256xi32>
    %188 = arith.sitofp %187 : vector<1x256xi32> to vector<1x256xf32>
    %c1_i32_74 = arith.constant 1 : i32
    %189 = vector.broadcast %c1_i32_74 : i32 to vector<1x256xi32>
    %190 = arith.addi %1, %189 : vector<1x256xi32>
    %c0_i32_75 = arith.constant 0 : i32
    %191 = vector.broadcast %c0_i32_75 : i32 to vector<1x256xi32>
    %192 = arith.cmpi sge, %190, %191 : vector<1x256xi32>
    %c1_i32_76 = arith.constant 1 : i32
    %193 = vector.broadcast %c1_i32_76 : i32 to vector<1x256xi32>
    %194 = arith.addi %1, %193 : vector<1x256xi32>
    %c16_i32_77 = arith.constant 16 : i32
    %195 = vector.broadcast %c16_i32_77 : i32 to vector<1x256xi32>
    %196 = arith.cmpi slt, %194, %195 : vector<1x256xi32>
    %197 = arith.andi %192, %196 : vector<1x256xi1>
    %c-1_i32_78 = arith.constant -1 : i32
    %198 = vector.broadcast %c-1_i32_78 : i32 to vector<1x256xi32>
    %199 = arith.addi %2, %198 : vector<1x256xi32>
    %c0_i32_79 = arith.constant 0 : i32
    %200 = vector.broadcast %c0_i32_79 : i32 to vector<1x256xi32>
    %201 = arith.cmpi sge, %199, %200 : vector<1x256xi32>
    %202 = arith.andi %197, %201 : vector<1x256xi1>
    %c-1_i32_80 = arith.constant -1 : i32
    %203 = vector.broadcast %c-1_i32_80 : i32 to vector<1x256xi32>
    %204 = arith.addi %2, %203 : vector<1x256xi32>
    %c16_i32_81 = arith.constant 16 : i32
    %205 = vector.broadcast %c16_i32_81 : i32 to vector<1x256xi32>
    %206 = arith.cmpi slt, %204, %205 : vector<1x256xi32>
    %207 = arith.andi %202, %206 : vector<1x256xi1>
    %208 = arith.extui %207 : vector<1x256xi1> to vector<1x256xi32>
    %209 = arith.sitofp %208 : vector<1x256xi32> to vector<1x256xf32>
    %c1_i32_82 = arith.constant 1 : i32
    %210 = vector.broadcast %c1_i32_82 : i32 to vector<1x256xi32>
    %211 = arith.addi %1, %210 : vector<1x256xi32>
    %c0_i32_83 = arith.constant 0 : i32
    %212 = vector.broadcast %c0_i32_83 : i32 to vector<1x256xi32>
    %213 = arith.cmpi sge, %211, %212 : vector<1x256xi32>
    %c1_i32_84 = arith.constant 1 : i32
    %214 = vector.broadcast %c1_i32_84 : i32 to vector<1x256xi32>
    %215 = arith.addi %1, %214 : vector<1x256xi32>
    %c16_i32_85 = arith.constant 16 : i32
    %216 = vector.broadcast %c16_i32_85 : i32 to vector<1x256xi32>
    %217 = arith.cmpi slt, %215, %216 : vector<1x256xi32>
    %218 = arith.andi %213, %217 : vector<1x256xi1>
    %c0_i32_86 = arith.constant 0 : i32
    %219 = vector.broadcast %c0_i32_86 : i32 to vector<1x256xi32>
    %220 = arith.addi %2, %219 : vector<1x256xi32>
    %c0_i32_87 = arith.constant 0 : i32
    %221 = vector.broadcast %c0_i32_87 : i32 to vector<1x256xi32>
    %222 = arith.cmpi sge, %220, %221 : vector<1x256xi32>
    %223 = arith.andi %218, %222 : vector<1x256xi1>
    %c0_i32_88 = arith.constant 0 : i32
    %224 = vector.broadcast %c0_i32_88 : i32 to vector<1x256xi32>
    %225 = arith.addi %2, %224 : vector<1x256xi32>
    %c16_i32_89 = arith.constant 16 : i32
    %226 = vector.broadcast %c16_i32_89 : i32 to vector<1x256xi32>
    %227 = arith.cmpi slt, %225, %226 : vector<1x256xi32>
    %228 = arith.andi %223, %227 : vector<1x256xi1>
    %229 = arith.extui %228 : vector<1x256xi1> to vector<1x256xi32>
    %230 = arith.sitofp %229 : vector<1x256xi32> to vector<1x256xf32>
    %c1_i32_90 = arith.constant 1 : i32
    %231 = vector.broadcast %c1_i32_90 : i32 to vector<1x256xi32>
    %232 = arith.addi %1, %231 : vector<1x256xi32>
    %c0_i32_91 = arith.constant 0 : i32
    %233 = vector.broadcast %c0_i32_91 : i32 to vector<1x256xi32>
    %234 = arith.cmpi sge, %232, %233 : vector<1x256xi32>
    %c1_i32_92 = arith.constant 1 : i32
    %235 = vector.broadcast %c1_i32_92 : i32 to vector<1x256xi32>
    %236 = arith.addi %1, %235 : vector<1x256xi32>
    %c16_i32_93 = arith.constant 16 : i32
    %237 = vector.broadcast %c16_i32_93 : i32 to vector<1x256xi32>
    %238 = arith.cmpi slt, %236, %237 : vector<1x256xi32>
    %239 = arith.andi %234, %238 : vector<1x256xi1>
    %c1_i32_94 = arith.constant 1 : i32
    %240 = vector.broadcast %c1_i32_94 : i32 to vector<1x256xi32>
    %241 = arith.addi %2, %240 : vector<1x256xi32>
    %c0_i32_95 = arith.constant 0 : i32
    %242 = vector.broadcast %c0_i32_95 : i32 to vector<1x256xi32>
    %243 = arith.cmpi sge, %241, %242 : vector<1x256xi32>
    %244 = arith.andi %239, %243 : vector<1x256xi1>
    %c1_i32_96 = arith.constant 1 : i32
    %245 = vector.broadcast %c1_i32_96 : i32 to vector<1x256xi32>
    %246 = arith.addi %2, %245 : vector<1x256xi32>
    %c16_i32_97 = arith.constant 16 : i32
    %247 = vector.broadcast %c16_i32_97 : i32 to vector<1x256xi32>
    %248 = arith.cmpi slt, %246, %247 : vector<1x256xi32>
    %249 = arith.andi %244, %248 : vector<1x256xi1>
    %250 = arith.extui %249 : vector<1x256xi1> to vector<1x256xi32>
    %251 = arith.sitofp %250 : vector<1x256xi32> to vector<1x256xf32>
    %cst_98 = arith.constant 0.000000e+00 : f32
    %252 = vector.broadcast %cst_98 : f32 to vector<4x256xf32>
    %c0_99 = arith.constant 0 : index
    %c0_100 = arith.constant 0 : index
    %253 = vector.load %arg15[%c0_99, %c0_100] : memref<4x256xf32, #tpu.memory_space<vmem>>, vector<4x256xf32>
    tpu.vector_store %arg15[%c0_99, %c0_100], %252 {strides = array<i32>} : memref<4x256xf32, #tpu.memory_space<vmem>>, vector<4x256xf32>,
    %c0_101 = arith.constant 0 : index
    %c0_102 = arith.constant 0 : index
    %254 = vector.load %arg13[%c0_101, %c0_102] : memref<4x256xf32, #tpu.memory_space<vmem>>, vector<4x256xf32>
    %c17_i32 = arith.constant 17 : i32
    %255 = tpu.dynamic_rotate %254 by %c17_i32 dim 1 : vector<4x256xf32>, i32 -> vector<4x256xf32>
    %256 = vector.broadcast %83 : vector<1x256xf32> to vector<4x256xf32>
    %257 = arith.mulf %255, %256 : vector<4x256xf32>
    %c17_i32_103 = arith.constant 17 : i32
    %258 = tpu.dynamic_rotate %62 by %c17_i32_103 dim 1 : vector<4x256xf32>, i32 -> vector<4x256xf32>
    %259 = vector.broadcast %83 : vector<1x256xf32> to vector<4x256xf32>
    %260 = arith.mulf %258, %259 : vector<4x256xf32>
    %c0_104 = arith.constant 0 : index
    %c0_105 = arith.constant 0 : index
    %261 = vector.load %arg15[%c0_104, %c0_105] : memref<4x256xf32, #tpu.memory_space<vmem>>, vector<4x256xf32>
    %c0_106 = arith.constant 0 : index
    %c0_107 = arith.constant 0 : index
    %c0_108 = arith.constant 0 : index
    %262 = vector.load %arg5[%c0_106, %c0_107, %c0_108] : memref<9x4x4xf32, #tpu.memory_space<vmem>>, vector<1x4x4xf32>
    %263 = vector.shape_cast %262 : vector<1x4x4xf32> to vector<4x4xf32>
    %cst_109 = arith.constant dense<0.000000e+00> : vector<4x256xf32>
    %264 = tpu.matmul %263, %257, %cst_109 {dimension_numbers = #tpu.dot_dimension_numbers<[1], [0], [0], [1], [0, 0, 1, 1], [], []>} : vector<4x4xf32>, vector<4x256xf32>, vector<4x256xf32> -> vector<4x256xf32>
    %c0_110 = arith.constant 0 : index
    %c0_111 = arith.constant 0 : index
    %c0_112 = arith.constant 0 : index
    %265 = vector.load %arg6[%c0_110, %c0_111, %c0_112] : memref<9x4x4xf32, #tpu.memory_space<vmem>>, vector<1x4x4xf32>
    %266 = vector.shape_cast %265 : vector<1x4x4xf32> to vector<4x4xf32>
    %cst_113 = arith.constant dense<0.000000e+00> : vector<4x256xf32>
    %267 = tpu.matmul %266, %260, %cst_113 {dimension_numbers = #tpu.dot_dimension_numbers<[1], [0], [0], [1], [0, 0, 1, 1], [], []>} : vector<4x4xf32>, vector<4x256xf32>, vector<4x256xf32> -> vector<4x256xf32>
    %268 = arith.addf %264, %267 : vector<4x256xf32>
    %269 = arith.addf %261, %268 : vector<4x256xf32>
    %c0_114 = arith.constant 0 : index
    %c0_115 = arith.constant 0 : index
    %270 = vector.load %arg15[%c0_114, %c0_115] : memref<4x256xf32, #tpu.memory_space<vmem>>, vector<4x256xf32>
    tpu.vector_store %arg15[%c0_114, %c0_115], %269 {strides = array<i32>} : memref<4x256xf32, #tpu.memory_space<vmem>>, vector<4x256xf32>,
    %c0_116 = arith.constant 0 : index
    %c0_117 = arith.constant 0 : index
    %271 = vector.load %arg13[%c0_116, %c0_117] : memref<4x256xf32, #tpu.memory_space<vmem>>, vector<4x256xf32>
    %c16_i32_118 = arith.constant 16 : i32
    %272 = tpu.dynamic_rotate %271 by %c16_i32_118 dim 1 : vector<4x256xf32>, i32 -> vector<4x256xf32>
    %273 = vector.broadcast %104 : vector<1x256xf32> to vector<4x256xf32>
    %274 = arith.mulf %272, %273 : vector<4x256xf32>
    %c16_i32_119 = arith.constant 16 : i32
    %275 = tpu.dynamic_rotate %62 by %c16_i32_119 dim 1 : vector<4x256xf32>, i32 -> vector<4x256xf32>
    %276 = vector.broadcast %104 : vector<1x256xf32> to vector<4x256xf32>
    %277 = arith.mulf %275, %276 : vector<4x256xf32>
    %c0_120 = arith.constant 0 : index
    %c0_121 = arith.constant 0 : index
    %278 = vector.load %arg15[%c0_120, %c0_121] : memref<4x256xf32, #tpu.memory_space<vmem>>, vector<4x256xf32>
    %c1_122 = arith.constant 1 : index
    %c0_123 = arith.constant 0 : index
    %c0_124 = arith.constant 0 : index
    %279 = vector.load %arg5[%c1_122, %c0_123, %c0_124] : memref<9x4x4xf32, #tpu.memory_space<vmem>>, vector<1x4x4xf32>
    %280 = vector.shape_cast %279 : vector<1x4x4xf32> to vector<4x4xf32>
    %cst_125 = arith.constant dense<0.000000e+00> : vector<4x256xf32>
    %281 = tpu.matmul %280, %274, %cst_125 {dimension_numbers = #tpu.dot_dimension_numbers<[1], [0], [0], [1], [0, 0, 1, 1], [], []>} : vector<4x4xf32>, vector<4x256xf32>, vector<4x256xf32> -> vector<4x256xf32>
    %c1_126 = arith.constant 1 : index
    %c0_127 = arith.constant 0 : index
    %c0_128 = arith.constant 0 : index
    %282 = vector.load %arg6[%c1_126, %c0_127, %c0_128] : memref<9x4x4xf32, #tpu.memory_space<vmem>>, vector<1x4x4xf32>
    %283 = vector.shape_cast %282 : vector<1x4x4xf32> to vector<4x4xf32>
    %cst_129 = arith.constant dense<0.000000e+00> : vector<4x256xf32>
    %284 = tpu.matmul %283, %277, %cst_129 {dimension_numbers = #tpu.dot_dimension_numbers<[1], [0], [0], [1], [0, 0, 1, 1], [], []>} : vector<4x4xf32>, vector<4x256xf32>, vector<4x256xf32> -> vector<4x256xf32>
    %285 = arith.addf %281, %284 : vector<4x256xf32>
    %286 = arith.addf %278, %285 : vector<4x256xf32>
    %c0_130 = arith.constant 0 : index
    %c0_131 = arith.constant 0 : index
    %287 = vector.load %arg15[%c0_130, %c0_131] : memref<4x256xf32, #tpu.memory_space<vmem>>, vector<4x256xf32>
    tpu.vector_store %arg15[%c0_130, %c0_131], %286 {strides = array<i32>} : memref<4x256xf32, #tpu.memory_space<vmem>>, vector<4x256xf32>,
    %c0_132 = arith.constant 0 : index
    %c0_133 = arith.constant 0 : index
    %288 = vector.load %arg13[%c0_132, %c0_133] : memref<4x256xf32, #tpu.memory_space<vmem>>, vector<4x256xf32>
    %c15_i32 = arith.constant 15 : i32
    %289 = tpu.dynamic_rotate %288 by %c15_i32 dim 1 : vector<4x256xf32>, i32 -> vector<4x256xf32>
    %290 = vector.broadcast %125 : vector<1x256xf32> to vector<4x256xf32>
    %291 = arith.mulf %289, %290 : vector<4x256xf32>
    %c15_i32_134 = arith.constant 15 : i32
    %292 = tpu.dynamic_rotate %62 by %c15_i32_134 dim 1 : vector<4x256xf32>, i32 -> vector<4x256xf32>
    %293 = vector.broadcast %125 : vector<1x256xf32> to vector<4x256xf32>
    %294 = arith.mulf %292, %293 : vector<4x256xf32>
    %c0_135 = arith.constant 0 : index
    %c0_136 = arith.constant 0 : index
    %295 = vector.load %arg15[%c0_135, %c0_136] : memref<4x256xf32, #tpu.memory_space<vmem>>, vector<4x256xf32>
    %c2_137 = arith.constant 2 : index
    %c0_138 = arith.constant 0 : index
    %c0_139 = arith.constant 0 : index
    %296 = vector.load %arg5[%c2_137, %c0_138, %c0_139] : memref<9x4x4xf32, #tpu.memory_space<vmem>>, vector<1x4x4xf32>
    %297 = vector.shape_cast %296 : vector<1x4x4xf32> to vector<4x4xf32>
    %cst_140 = arith.constant dense<0.000000e+00> : vector<4x256xf32>
    %298 = tpu.matmul %297, %291, %cst_140 {dimension_numbers = #tpu.dot_dimension_numbers<[1], [0], [0], [1], [0, 0, 1, 1], [], []>} : vector<4x4xf32>, vector<4x256xf32>, vector<4x256xf32> -> vector<4x256xf32>
    %c2_141 = arith.constant 2 : index
    %c0_142 = arith.constant 0 : index
    %c0_143 = arith.constant 0 : index
    %299 = vector.load %arg6[%c2_141, %c0_142, %c0_143] : memref<9x4x4xf32, #tpu.memory_space<vmem>>, vector<1x4x4xf32>
    %300 = vector.shape_cast %299 : vector<1x4x4xf32> to vector<4x4xf32>
    %cst_144 = arith.constant dense<0.000000e+00> : vector<4x256xf32>
    %301 = tpu.matmul %300, %294, %cst_144 {dimension_numbers = #tpu.dot_dimension_numbers<[1], [0], [0], [1], [0, 0, 1, 1], [], []>} : vector<4x4xf32>, vector<4x256xf32>, vector<4x256xf32> -> vector<4x256xf32>
    %302 = arith.addf %298, %301 : vector<4x256xf32>
    %303 = arith.addf %295, %302 : vector<4x256xf32>
    %c0_145 = arith.constant 0 : index
    %c0_146 = arith.constant 0 : index
    %304 = vector.load %arg15[%c0_145, %c0_146] : memref<4x256xf32, #tpu.memory_space<vmem>>, vector<4x256xf32>
    tpu.vector_store %arg15[%c0_145, %c0_146], %303 {strides = array<i32>} : memref<4x256xf32, #tpu.memory_space<vmem>>, vector<4x256xf32>,
    %c0_147 = arith.constant 0 : index
    %c0_148 = arith.constant 0 : index
    %305 = vector.load %arg13[%c0_147, %c0_148] : memref<4x256xf32, #tpu.memory_space<vmem>>, vector<4x256xf32>
    %c1_i32_149 = arith.constant 1 : i32
    %306 = tpu.dynamic_rotate %305 by %c1_i32_149 dim 1 : vector<4x256xf32>, i32 -> vector<4x256xf32>
    %307 = vector.broadcast %146 : vector<1x256xf32> to vector<4x256xf32>
    %308 = arith.mulf %306, %307 : vector<4x256xf32>
    %c1_i32_150 = arith.constant 1 : i32
    %309 = tpu.dynamic_rotate %62 by %c1_i32_150 dim 1 : vector<4x256xf32>, i32 -> vector<4x256xf32>
    %310 = vector.broadcast %146 : vector<1x256xf32> to vector<4x256xf32>
    %311 = arith.mulf %309, %310 : vector<4x256xf32>
    %c0_151 = arith.constant 0 : index
    %c0_152 = arith.constant 0 : index
    %312 = vector.load %arg15[%c0_151, %c0_152] : memref<4x256xf32, #tpu.memory_space<vmem>>, vector<4x256xf32>
    %c3_153 = arith.constant 3 : index
    %c0_154 = arith.constant 0 : index
    %c0_155 = arith.constant 0 : index
    %313 = vector.load %arg5[%c3_153, %c0_154, %c0_155] : memref<9x4x4xf32, #tpu.memory_space<vmem>>, vector<1x4x4xf32>
    %314 = vector.shape_cast %313 : vector<1x4x4xf32> to vector<4x4xf32>
    %cst_156 = arith.constant dense<0.000000e+00> : vector<4x256xf32>
    %315 = tpu.matmul %314, %308, %cst_156 {dimension_numbers = #tpu.dot_dimension_numbers<[1], [0], [0], [1], [0, 0, 1, 1], [], []>} : vector<4x4xf32>, vector<4x256xf32>, vector<4x256xf32> -> vector<4x256xf32>
    %c3_157 = arith.constant 3 : index
    %c0_158 = arith.constant 0 : index
    %c0_159 = arith.constant 0 : index
    %316 = vector.load %arg6[%c3_157, %c0_158, %c0_159] : memref<9x4x4xf32, #tpu.memory_space<vmem>>, vector<1x4x4xf32>
    %317 = vector.shape_cast %316 : vector<1x4x4xf32> to vector<4x4xf32>
    %cst_160 = arith.constant dense<0.000000e+00> : vector<4x256xf32>
    %318 = tpu.matmul %317, %311, %cst_160 {dimension_numbers = #tpu.dot_dimension_numbers<[1], [0], [0], [1], [0, 0, 1, 1], [], []>} : vector<4x4xf32>, vector<4x256xf32>, vector<4x256xf32> -> vector<4x256xf32>
    %319 = arith.addf %315, %318 : vector<4x256xf32>
    %320 = arith.addf %312, %319 : vector<4x256xf32>
    %c0_161 = arith.constant 0 : index
    %c0_162 = arith.constant 0 : index
    %321 = vector.load %arg15[%c0_161, %c0_162] : memref<4x256xf32, #tpu.memory_space<vmem>>, vector<4x256xf32>
    tpu.vector_store %arg15[%c0_161, %c0_162], %320 {strides = array<i32>} : memref<4x256xf32, #tpu.memory_space<vmem>>, vector<4x256xf32>,
    %c0_163 = arith.constant 0 : index
    %c0_164 = arith.constant 0 : index
    %322 = vector.load %arg13[%c0_163, %c0_164] : memref<4x256xf32, #tpu.memory_space<vmem>>, vector<4x256xf32>
    %323 = vector.broadcast %167 : vector<1x256xf32> to vector<4x256xf32>
    %324 = arith.mulf %322, %323 : vector<4x256xf32>
    %325 = vector.broadcast %167 : vector<1x256xf32> to vector<4x256xf32>
    %326 = arith.mulf %62, %325 : vector<4x256xf32>
    %c0_165 = arith.constant 0 : index
    %c0_166 = arith.constant 0 : index
    %327 = vector.load %arg15[%c0_165, %c0_166] : memref<4x256xf32, #tpu.memory_space<vmem>>, vector<4x256xf32>
    %c4 = arith.constant 4 : index
    %c0_167 = arith.constant 0 : index
    %c0_168 = arith.constant 0 : index
    %328 = vector.load %arg5[%c4, %c0_167, %c0_168] : memref<9x4x4xf32, #tpu.memory_space<vmem>>, vector<1x4x4xf32>
    %329 = vector.shape_cast %328 : vector<1x4x4xf32> to vector<4x4xf32>
    %cst_169 = arith.constant dense<0.000000e+00> : vector<4x256xf32>
    %330 = tpu.matmul %329, %324, %cst_169 {dimension_numbers = #tpu.dot_dimension_numbers<[1], [0], [0], [1], [0, 0, 1, 1], [], []>} : vector<4x4xf32>, vector<4x256xf32>, vector<4x256xf32> -> vector<4x256xf32>
    %c4_170 = arith.constant 4 : index
    %c0_171 = arith.constant 0 : index
    %c0_172 = arith.constant 0 : index
    %331 = vector.load %arg6[%c4_170, %c0_171, %c0_172] : memref<9x4x4xf32, #tpu.memory_space<vmem>>, vector<1x4x4xf32>
    %332 = vector.shape_cast %331 : vector<1x4x4xf32> to vector<4x4xf32>
    %cst_173 = arith.constant dense<0.000000e+00> : vector<4x256xf32>
    %333 = tpu.matmul %332, %326, %cst_173 {dimension_numbers = #tpu.dot_dimension_numbers<[1], [0], [0], [1], [0, 0, 1, 1], [], []>} : vector<4x4xf32>, vector<4x256xf32>, vector<4x256xf32> -> vector<4x256xf32>
    %334 = arith.addf %330, %333 : vector<4x256xf32>
    %335 = arith.addf %327, %334 : vector<4x256xf32>
    %c0_174 = arith.constant 0 : index
    %c0_175 = arith.constant 0 : index
    %336 = vector.load %arg15[%c0_174, %c0_175] : memref<4x256xf32, #tpu.memory_space<vmem>>, vector<4x256xf32>
    tpu.vector_store %arg15[%c0_174, %c0_175], %335 {strides = array<i32>} : memref<4x256xf32, #tpu.memory_space<vmem>>, vector<4x256xf32>,
    %c0_176 = arith.constant 0 : index
    %c0_177 = arith.constant 0 : index
    %337 = vector.load %arg13[%c0_176, %c0_177] : memref<4x256xf32, #tpu.memory_space<vmem>>, vector<4x256xf32>
    %c255_i32 = arith.constant 255 : i32
    %338 = tpu.dynamic_rotate %337 by %c255_i32 dim 1 : vector<4x256xf32>, i32 -> vector<4x256xf32>
    %339 = vector.broadcast %188 : vector<1x256xf32> to vector<4x256xf32>
    %340 = arith.mulf %338, %339 : vector<4x256xf32>
    %c255_i32_178 = arith.constant 255 : i32
    %341 = tpu.dynamic_rotate %62 by %c255_i32_178 dim 1 : vector<4x256xf32>, i32 -> vector<4x256xf32>
    %342 = vector.broadcast %188 : vector<1x256xf32> to vector<4x256xf32>
    %343 = arith.mulf %341, %342 : vector<4x256xf32>
    %c0_179 = arith.constant 0 : index
    %c0_180 = arith.constant 0 : index
    %344 = vector.load %arg15[%c0_179, %c0_180] : memref<4x256xf32, #tpu.memory_space<vmem>>, vector<4x256xf32>
    %c5 = arith.constant 5 : index
    %c0_181 = arith.constant 0 : index
    %c0_182 = arith.constant 0 : index
    %345 = vector.load %arg5[%c5, %c0_181, %c0_182] : memref<9x4x4xf32, #tpu.memory_space<vmem>>, vector<1x4x4xf32>
    %346 = vector.shape_cast %345 : vector<1x4x4xf32> to vector<4x4xf32>
    %cst_183 = arith.constant dense<0.000000e+00> : vector<4x256xf32>
    %347 = tpu.matmul %346, %340, %cst_183 {dimension_numbers = #tpu.dot_dimension_numbers<[1], [0], [0], [1], [0, 0, 1, 1], [], []>} : vector<4x4xf32>, vector<4x256xf32>, vector<4x256xf32> -> vector<4x256xf32>
    %c5_184 = arith.constant 5 : index
    %c0_185 = arith.constant 0 : index
    %c0_186 = arith.constant 0 : index
    %348 = vector.load %arg6[%c5_184, %c0_185, %c0_186] : memref<9x4x4xf32, #tpu.memory_space<vmem>>, vector<1x4x4xf32>
    %349 = vector.shape_cast %348 : vector<1x4x4xf32> to vector<4x4xf32>
    %cst_187 = arith.constant dense<0.000000e+00> : vector<4x256xf32>
    %350 = tpu.matmul %349, %343, %cst_187 {dimension_numbers = #tpu.dot_dimension_numbers<[1], [0], [0], [1], [0, 0, 1, 1], [], []>} : vector<4x4xf32>, vector<4x256xf32>, vector<4x256xf32> -> vector<4x256xf32>
    %351 = arith.addf %347, %350 : vector<4x256xf32>
    %352 = arith.addf %344, %351 : vector<4x256xf32>
    %c0_188 = arith.constant 0 : index
    %c0_189 = arith.constant 0 : index
    %353 = vector.load %arg15[%c0_188, %c0_189] : memref<4x256xf32, #tpu.memory_space<vmem>>, vector<4x256xf32>
    tpu.vector_store %arg15[%c0_188, %c0_189], %352 {strides = array<i32>} : memref<4x256xf32, #tpu.memory_space<vmem>>, vector<4x256xf32>,
    %c0_190 = arith.constant 0 : index
    %c0_191 = arith.constant 0 : index
    %354 = vector.load %arg13[%c0_190, %c0_191] : memref<4x256xf32, #tpu.memory_space<vmem>>, vector<4x256xf32>
    %c241_i32 = arith.constant 241 : i32
    %355 = tpu.dynamic_rotate %354 by %c241_i32 dim 1 : vector<4x256xf32>, i32 -> vector<4x256xf32>
    %356 = vector.broadcast %209 : vector<1x256xf32> to vector<4x256xf32>
    %357 = arith.mulf %355, %356 : vector<4x256xf32>
    %c241_i32_192 = arith.constant 241 : i32
    %358 = tpu.dynamic_rotate %62 by %c241_i32_192 dim 1 : vector<4x256xf32>, i32 -> vector<4x256xf32>
    %359 = vector.broadcast %209 : vector<1x256xf32> to vector<4x256xf32>
    %360 = arith.mulf %358, %359 : vector<4x256xf32>
    %c0_193 = arith.constant 0 : index
    %c0_194 = arith.constant 0 : index
    %361 = vector.load %arg15[%c0_193, %c0_194] : memref<4x256xf32, #tpu.memory_space<vmem>>, vector<4x256xf32>
    %c6 = arith.constant 6 : index
    %c0_195 = arith.constant 0 : index
    %c0_196 = arith.constant 0 : index
    %362 = vector.load %arg5[%c6, %c0_195, %c0_196] : memref<9x4x4xf32, #tpu.memory_space<vmem>>, vector<1x4x4xf32>
    %363 = vector.shape_cast %362 : vector<1x4x4xf32> to vector<4x4xf32>
    %cst_197 = arith.constant dense<0.000000e+00> : vector<4x256xf32>
    %364 = tpu.matmul %363, %357, %cst_197 {dimension_numbers = #tpu.dot_dimension_numbers<[1], [0], [0], [1], [0, 0, 1, 1], [], []>} : vector<4x4xf32>, vector<4x256xf32>, vector<4x256xf32> -> vector<4x256xf32>
    %c6_198 = arith.constant 6 : index
    %c0_199 = arith.constant 0 : index
    %c0_200 = arith.constant 0 : index
    %365 = vector.load %arg6[%c6_198, %c0_199, %c0_200] : memref<9x4x4xf32, #tpu.memory_space<vmem>>, vector<1x4x4xf32>
    %366 = vector.shape_cast %365 : vector<1x4x4xf32> to vector<4x4xf32>
    %cst_201 = arith.constant dense<0.000000e+00> : vector<4x256xf32>
    %367 = tpu.matmul %366, %360, %cst_201 {dimension_numbers = #tpu.dot_dimension_numbers<[1], [0], [0], [1], [0, 0, 1, 1], [], []>} : vector<4x4xf32>, vector<4x256xf32>, vector<4x256xf32> -> vector<4x256xf32>
    %368 = arith.addf %364, %367 : vector<4x256xf32>
    %369 = arith.addf %361, %368 : vector<4x256xf32>
    %c0_202 = arith.constant 0 : index
    %c0_203 = arith.constant 0 : index
    %370 = vector.load %arg15[%c0_202, %c0_203] : memref<4x256xf32, #tpu.memory_space<vmem>>, vector<4x256xf32>
    tpu.vector_store %arg15[%c0_202, %c0_203], %369 {strides = array<i32>} : memref<4x256xf32, #tpu.memory_space<vmem>>, vector<4x256xf32>,
    %c0_204 = arith.constant 0 : index
    %c0_205 = arith.constant 0 : index
    %371 = vector.load %arg13[%c0_204, %c0_205] : memref<4x256xf32, #tpu.memory_space<vmem>>, vector<4x256xf32>
    %c240_i32 = arith.constant 240 : i32
    %372 = tpu.dynamic_rotate %371 by %c240_i32 dim 1 : vector<4x256xf32>, i32 -> vector<4x256xf32>
    %373 = vector.broadcast %230 : vector<1x256xf32> to vector<4x256xf32>
    %374 = arith.mulf %372, %373 : vector<4x256xf32>
    %c240_i32_206 = arith.constant 240 : i32
    %375 = tpu.dynamic_rotate %62 by %c240_i32_206 dim 1 : vector<4x256xf32>, i32 -> vector<4x256xf32>
    %376 = vector.broadcast %230 : vector<1x256xf32> to vector<4x256xf32>
    %377 = arith.mulf %375, %376 : vector<4x256xf32>
    %c0_207 = arith.constant 0 : index
    %c0_208 = arith.constant 0 : index
    %378 = vector.load %arg15[%c0_207, %c0_208] : memref<4x256xf32, #tpu.memory_space<vmem>>, vector<4x256xf32>
    %c7 = arith.constant 7 : index
    %c0_209 = arith.constant 0 : index
    %c0_210 = arith.constant 0 : index
    %379 = vector.load %arg5[%c7, %c0_209, %c0_210] : memref<9x4x4xf32, #tpu.memory_space<vmem>>, vector<1x4x4xf32>
    %380 = vector.shape_cast %379 : vector<1x4x4xf32> to vector<4x4xf32>
    %cst_211 = arith.constant dense<0.000000e+00> : vector<4x256xf32>
    %381 = tpu.matmul %380, %374, %cst_211 {dimension_numbers = #tpu.dot_dimension_numbers<[1], [0], [0], [1], [0, 0, 1, 1], [], []>} : vector<4x4xf32>, vector<4x256xf32>, vector<4x256xf32> -> vector<4x256xf32>
    %c7_212 = arith.constant 7 : index
    %c0_213 = arith.constant 0 : index
    %c0_214 = arith.constant 0 : index
    %382 = vector.load %arg6[%c7_212, %c0_213, %c0_214] : memref<9x4x4xf32, #tpu.memory_space<vmem>>, vector<1x4x4xf32>
    %383 = vector.shape_cast %382 : vector<1x4x4xf32> to vector<4x4xf32>
    %cst_215 = arith.constant dense<0.000000e+00> : vector<4x256xf32>
    %384 = tpu.matmul %383, %377, %cst_215 {dimension_numbers = #tpu.dot_dimension_numbers<[1], [0], [0], [1], [0, 0, 1, 1], [], []>} : vector<4x4xf32>, vector<4x256xf32>, vector<4x256xf32> -> vector<4x256xf32>
    %385 = arith.addf %381, %384 : vector<4x256xf32>
    %386 = arith.addf %378, %385 : vector<4x256xf32>
    %c0_216 = arith.constant 0 : index
    %c0_217 = arith.constant 0 : index
    %387 = vector.load %arg15[%c0_216, %c0_217] : memref<4x256xf32, #tpu.memory_space<vmem>>, vector<4x256xf32>
    tpu.vector_store %arg15[%c0_216, %c0_217], %386 {strides = array<i32>} : memref<4x256xf32, #tpu.memory_space<vmem>>, vector<4x256xf32>,
    %c0_218 = arith.constant 0 : index
    %c0_219 = arith.constant 0 : index
    %388 = vector.load %arg13[%c0_218, %c0_219] : memref<4x256xf32, #tpu.memory_space<vmem>>, vector<4x256xf32>
    %c239_i32 = arith.constant 239 : i32
    %389 = tpu.dynamic_rotate %388 by %c239_i32 dim 1 : vector<4x256xf32>, i32 -> vector<4x256xf32>
    %390 = vector.broadcast %251 : vector<1x256xf32> to vector<4x256xf32>
    %391 = arith.mulf %389, %390 : vector<4x256xf32>
    %c239_i32_220 = arith.constant 239 : i32
    %392 = tpu.dynamic_rotate %62 by %c239_i32_220 dim 1 : vector<4x256xf32>, i32 -> vector<4x256xf32>
    %393 = vector.broadcast %251 : vector<1x256xf32> to vector<4x256xf32>
    %394 = arith.mulf %392, %393 : vector<4x256xf32>
    %c0_221 = arith.constant 0 : index
    %c0_222 = arith.constant 0 : index
    %395 = vector.load %arg15[%c0_221, %c0_222] : memref<4x256xf32, #tpu.memory_space<vmem>>, vector<4x256xf32>
    %c8 = arith.constant 8 : index
    %c0_223 = arith.constant 0 : index
    %c0_224 = arith.constant 0 : index
    %396 = vector.load %arg5[%c8, %c0_223, %c0_224] : memref<9x4x4xf32, #tpu.memory_space<vmem>>, vector<1x4x4xf32>
    %397 = vector.shape_cast %396 : vector<1x4x4xf32> to vector<4x4xf32>
    %cst_225 = arith.constant dense<0.000000e+00> : vector<4x256xf32>
    %398 = tpu.matmul %397, %391, %cst_225 {dimension_numbers = #tpu.dot_dimension_numbers<[1], [0], [0], [1], [0, 0, 1, 1], [], []>} : vector<4x4xf32>, vector<4x256xf32>, vector<4x256xf32> -> vector<4x256xf32>
    %c8_226 = arith.constant 8 : index
    %c0_227 = arith.constant 0 : index
    %c0_228 = arith.constant 0 : index
    %399 = vector.load %arg6[%c8_226, %c0_227, %c0_228] : memref<9x4x4xf32, #tpu.memory_space<vmem>>, vector<1x4x4xf32>
    %400 = vector.shape_cast %399 : vector<1x4x4xf32> to vector<4x4xf32>
    %cst_229 = arith.constant dense<0.000000e+00> : vector<4x256xf32>
    %401 = tpu.matmul %400, %394, %cst_229 {dimension_numbers = #tpu.dot_dimension_numbers<[1], [0], [0], [1], [0, 0, 1, 1], [], []>} : vector<4x4xf32>, vector<4x256xf32>, vector<4x256xf32> -> vector<4x256xf32>
    %402 = arith.addf %398, %401 : vector<4x256xf32>
    %403 = arith.addf %395, %402 : vector<4x256xf32>
    %c0_230 = arith.constant 0 : index
    %c0_231 = arith.constant 0 : index
    %404 = vector.load %arg15[%c0_230, %c0_231] : memref<4x256xf32, #tpu.memory_space<vmem>>, vector<4x256xf32>
    tpu.vector_store %arg15[%c0_230, %c0_231], %403 {strides = array<i32>} : memref<4x256xf32, #tpu.memory_space<vmem>>, vector<4x256xf32>,
    %c0_232 = arith.constant 0 : index
    %c0_233 = arith.constant 0 : index
    %405 = vector.load %arg15[%c0_232, %c0_233] : memref<4x256xf32, #tpu.memory_space<vmem>>, vector<4x256xf32>
    %cst_234 = arith.constant dense<0.000000e+00> : vector<4xf32>
    %406 = vector.multi_reduction <add>, %405, %cst_234 [1] : vector<4x256xf32> to vector<4xf32>
    %407 = vector.shape_cast %406 : vector<4xf32> to vector<4x1xf32>
    %cst_235 = arith.constant 2.560000e+02 : f32
    %408 = vector.broadcast %cst_235 : f32 to vector<4x1xf32>
    %409 = arith.divf %407, %408 : vector<4x1xf32>
    %410 = vector.broadcast %409 : vector<4x1xf32> to vector<4x256xf32>
    %411 = arith.subf %405, %410 : vector<4x256xf32>
    %412 = arith.mulf %411, %411 : vector<4x256xf32>
    %cst_236 = arith.constant dense<0.000000e+00> : vector<4xf32>
    %413 = vector.multi_reduction <add>, %412, %cst_236 [1] : vector<4x256xf32> to vector<4xf32>
    %414 = vector.shape_cast %413 : vector<4xf32> to vector<4x1xf32>
    %cst_237 = arith.constant 2.560000e+02 : f32
    %415 = vector.broadcast %cst_237 : f32 to vector<4x1xf32>
    %416 = arith.divf %414, %415 : vector<4x1xf32>
    %417 = vector.broadcast %409 : vector<4x1xf32> to vector<4x256xf32>
    %418 = arith.subf %405, %417 : vector<4x256xf32>
    %cst_238 = arith.constant 9.99999974E-6 : f32
    %419 = vector.broadcast %cst_238 : f32 to vector<4x1xf32>
    %420 = arith.addf %416, %419 : vector<4x1xf32>
    %421 = math.rsqrt %420 : vector<4x1xf32>
    %422 = vector.broadcast %421 : vector<4x1xf32> to vector<4x256xf32>
    %423 = arith.mulf %418, %422 : vector<4x256xf32>
    %c0_239 = arith.constant 0 : index
    %c0_240 = arith.constant 0 : index
    %424 = vector.load %arg8[%c0_239, %c0_240] : memref<4x1xf32, #tpu.memory_space<vmem>>, vector<4x1xf32>
    %425 = vector.broadcast %424 : vector<4x1xf32> to vector<4x256xf32>
    %426 = arith.mulf %423, %425 : vector<4x256xf32>
    %c0_241 = arith.constant 0 : index
    %c0_242 = arith.constant 0 : index
    %427 = vector.load %arg9[%c0_241, %c0_242] : memref<4x1xf32, #tpu.memory_space<vmem>>, vector<4x1xf32>
    %428 = vector.broadcast %427 : vector<4x1xf32> to vector<4x256xf32>
    %429 = arith.addf %426, %428 : vector<4x256xf32>
    %cst_243 = arith.constant 0.000000e+00 : f32
    %430 = vector.broadcast %cst_243 : f32 to vector<4x256xf32>
    %431 = arith.cmpf oge, %429, %430 : vector<4x256xf32>
    %cst_244 = arith.constant 0.00999999977 : f32
    %432 = vector.broadcast %cst_244 : f32 to vector<4x256xf32>
    %433 = arith.mulf %432, %429 : vector<4x256xf32>
    %434 = arith.select %431, %429, %433 : vector<4x256xi1>, vector<4x256xf32>
    %c0_245 = arith.constant 0 : index
    %c0_246 = arith.constant 0 : index
    %435 = vector.load %arg14[%c0_245, %c0_246] : memref<4x256xf32, #tpu.memory_space<vmem>>, vector<4x256xf32>
    tpu.vector_store %arg14[%c0_245, %c0_246], %434 {strides = array<i32>} : memref<4x256xf32, #tpu.memory_space<vmem>>, vector<4x256xf32>,
    %cst_247 = arith.constant 0.000000e+00 : f32
    %436 = vector.broadcast %cst_247 : f32 to vector<4x256xf32>
    %c0_248 = arith.constant 0 : index
    %c0_249 = arith.constant 0 : index
    %437 = vector.load %arg15[%c0_248, %c0_249] : memref<4x256xf32, #tpu.memory_space<vmem>>, vector<4x256xf32>
    tpu.vector_store %arg15[%c0_248, %c0_249], %436 {strides = array<i32>} : memref<4x256xf32, #tpu.memory_space<vmem>>, vector<4x256xf32>,
    %c0_250 = arith.constant 0 : index
    %c0_251 = arith.constant 0 : index
    %438 = vector.load %arg14[%c0_250, %c0_251] : memref<4x256xf32, #tpu.memory_space<vmem>>, vector<4x256xf32>
    %c17_i32_252 = arith.constant 17 : i32
    %439 = tpu.dynamic_rotate %438 by %c17_i32_252 dim 1 : vector<4x256xf32>, i32 -> vector<4x256xf32>
    %440 = vector.broadcast %83 : vector<1x256xf32> to vector<4x256xf32>
    %441 = arith.mulf %439, %440 : vector<4x256xf32>
    %c0_253 = arith.constant 0 : index
    %c0_254 = arith.constant 0 : index
    %442 = vector.load %arg15[%c0_253, %c0_254] : memref<4x256xf32, #tpu.memory_space<vmem>>, vector<4x256xf32>
    %c0_255 = arith.constant 0 : index
    %c0_256 = arith.constant 0 : index
    %c0_257 = arith.constant 0 : index
    %443 = vector.load %arg7[%c0_255, %c0_256, %c0_257] : memref<9x4x4xf32, #tpu.memory_space<vmem>>, vector<1x4x4xf32>
    %444 = vector.shape_cast %443 : vector<1x4x4xf32> to vector<4x4xf32>
    %cst_258 = arith.constant dense<0.000000e+00> : vector<4x256xf32>
    %445 = tpu.matmul %444, %441, %cst_258 {dimension_numbers = #tpu.dot_dimension_numbers<[1], [0], [0], [1], [0, 0, 1, 1], [], []>} : vector<4x4xf32>, vector<4x256xf32>, vector<4x256xf32> -> vector<4x256xf32>
    %446 = arith.addf %442, %445 : vector<4x256xf32>
    %c0_259 = arith.constant 0 : index
    %c0_260 = arith.constant 0 : index
    %447 = vector.load %arg15[%c0_259, %c0_260] : memref<4x256xf32, #tpu.memory_space<vmem>>, vector<4x256xf32>
    tpu.vector_store %arg15[%c0_259, %c0_260], %446 {strides = array<i32>} : memref<4x256xf32, #tpu.memory_space<vmem>>, vector<4x256xf32>,
    %c0_261 = arith.constant 0 : index
    %c0_262 = arith.constant 0 : index
    %448 = vector.load %arg14[%c0_261, %c0_262] : memref<4x256xf32, #tpu.memory_space<vmem>>, vector<4x256xf32>
    %c16_i32_263 = arith.constant 16 : i32
    %449 = tpu.dynamic_rotate %448 by %c16_i32_263 dim 1 : vector<4x256xf32>, i32 -> vector<4x256xf32>
    %450 = vector.broadcast %104 : vector<1x256xf32> to vector<4x256xf32>
    %451 = arith.mulf %449, %450 : vector<4x256xf32>
    %c0_264 = arith.constant 0 : index
    %c0_265 = arith.constant 0 : index
    %452 = vector.load %arg15[%c0_264, %c0_265] : memref<4x256xf32, #tpu.memory_space<vmem>>, vector<4x256xf32>
    %c1_266 = arith.constant 1 : index
    %c0_267 = arith.constant 0 : index
    %c0_268 = arith.constant 0 : index
    %453 = vector.load %arg7[%c1_266, %c0_267, %c0_268] : memref<9x4x4xf32, #tpu.memory_space<vmem>>, vector<1x4x4xf32>
    %454 = vector.shape_cast %453 : vector<1x4x4xf32> to vector<4x4xf32>
    %cst_269 = arith.constant dense<0.000000e+00> : vector<4x256xf32>
    %455 = tpu.matmul %454, %451, %cst_269 {dimension_numbers = #tpu.dot_dimension_numbers<[1], [0], [0], [1], [0, 0, 1, 1], [], []>} : vector<4x4xf32>, vector<4x256xf32>, vector<4x256xf32> -> vector<4x256xf32>
    %456 = arith.addf %452, %455 : vector<4x256xf32>
    %c0_270 = arith.constant 0 : index
    %c0_271 = arith.constant 0 : index
    %457 = vector.load %arg15[%c0_270, %c0_271] : memref<4x256xf32, #tpu.memory_space<vmem>>, vector<4x256xf32>
    tpu.vector_store %arg15[%c0_270, %c0_271], %456 {strides = array<i32>} : memref<4x256xf32, #tpu.memory_space<vmem>>, vector<4x256xf32>,
    %c0_272 = arith.constant 0 : index
    %c0_273 = arith.constant 0 : index
    %458 = vector.load %arg14[%c0_272, %c0_273] : memref<4x256xf32, #tpu.memory_space<vmem>>, vector<4x256xf32>
    %c15_i32_274 = arith.constant 15 : i32
    %459 = tpu.dynamic_rotate %458 by %c15_i32_274 dim 1 : vector<4x256xf32>, i32 -> vector<4x256xf32>
    %460 = vector.broadcast %125 : vector<1x256xf32> to vector<4x256xf32>
    %461 = arith.mulf %459, %460 : vector<4x256xf32>
    %c0_275 = arith.constant 0 : index
    %c0_276 = arith.constant 0 : index
    %462 = vector.load %arg15[%c0_275, %c0_276] : memref<4x256xf32, #tpu.memory_space<vmem>>, vector<4x256xf32>
    %c2_277 = arith.constant 2 : index
    %c0_278 = arith.constant 0 : index
    %c0_279 = arith.constant 0 : index
    %463 = vector.load %arg7[%c2_277, %c0_278, %c0_279] : memref<9x4x4xf32, #tpu.memory_space<vmem>>, vector<1x4x4xf32>
    %464 = vector.shape_cast %463 : vector<1x4x4xf32> to vector<4x4xf32>
    %cst_280 = arith.constant dense<0.000000e+00> : vector<4x256xf32>
    %465 = tpu.matmul %464, %461, %cst_280 {dimension_numbers = #tpu.dot_dimension_numbers<[1], [0], [0], [1], [0, 0, 1, 1], [], []>} : vector<4x4xf32>, vector<4x256xf32>, vector<4x256xf32> -> vector<4x256xf32>
    %466 = arith.addf %462, %465 : vector<4x256xf32>
    %c0_281 = arith.constant 0 : index
    %c0_282 = arith.constant 0 : index
    %467 = vector.load %arg15[%c0_281, %c0_282] : memref<4x256xf32, #tpu.memory_space<vmem>>, vector<4x256xf32>
    tpu.vector_store %arg15[%c0_281, %c0_282], %466 {strides = array<i32>} : memref<4x256xf32, #tpu.memory_space<vmem>>, vector<4x256xf32>,
    %c0_283 = arith.constant 0 : index
    %c0_284 = arith.constant 0 : index
    %468 = vector.load %arg14[%c0_283, %c0_284] : memref<4x256xf32, #tpu.memory_space<vmem>>, vector<4x256xf32>
    %c1_i32_285 = arith.constant 1 : i32
    %469 = tpu.dynamic_rotate %468 by %c1_i32_285 dim 1 : vector<4x256xf32>, i32 -> vector<4x256xf32>
    %470 = vector.broadcast %146 : vector<1x256xf32> to vector<4x256xf32>
    %471 = arith.mulf %469, %470 : vector<4x256xf32>
    %c0_286 = arith.constant 0 : index
    %c0_287 = arith.constant 0 : index
    %472 = vector.load %arg15[%c0_286, %c0_287] : memref<4x256xf32, #tpu.memory_space<vmem>>, vector<4x256xf32>
    %c3_288 = arith.constant 3 : index
    %c0_289 = arith.constant 0 : index
    %c0_290 = arith.constant 0 : index
    %473 = vector.load %arg7[%c3_288, %c0_289, %c0_290] : memref<9x4x4xf32, #tpu.memory_space<vmem>>, vector<1x4x4xf32>
    %474 = vector.shape_cast %473 : vector<1x4x4xf32> to vector<4x4xf32>
    %cst_291 = arith.constant dense<0.000000e+00> : vector<4x256xf32>
    %475 = tpu.matmul %474, %471, %cst_291 {dimension_numbers = #tpu.dot_dimension_numbers<[1], [0], [0], [1], [0, 0, 1, 1], [], []>} : vector<4x4xf32>, vector<4x256xf32>, vector<4x256xf32> -> vector<4x256xf32>
    %476 = arith.addf %472, %475 : vector<4x256xf32>
    %c0_292 = arith.constant 0 : index
    %c0_293 = arith.constant 0 : index
    %477 = vector.load %arg15[%c0_292, %c0_293] : memref<4x256xf32, #tpu.memory_space<vmem>>, vector<4x256xf32>
    tpu.vector_store %arg15[%c0_292, %c0_293], %476 {strides = array<i32>} : memref<4x256xf32, #tpu.memory_space<vmem>>, vector<4x256xf32>,
    %c0_294 = arith.constant 0 : index
    %c0_295 = arith.constant 0 : index
    %478 = vector.load %arg14[%c0_294, %c0_295] : memref<4x256xf32, #tpu.memory_space<vmem>>, vector<4x256xf32>
    %479 = vector.broadcast %167 : vector<1x256xf32> to vector<4x256xf32>
    %480 = arith.mulf %478, %479 : vector<4x256xf32>
    %c0_296 = arith.constant 0 : index
    %c0_297 = arith.constant 0 : index
    %481 = vector.load %arg15[%c0_296, %c0_297] : memref<4x256xf32, #tpu.memory_space<vmem>>, vector<4x256xf32>
    %c4_298 = arith.constant 4 : index
    %c0_299 = arith.constant 0 : index
    %c0_300 = arith.constant 0 : index
    %482 = vector.load %arg7[%c4_298, %c0_299, %c0_300] : memref<9x4x4xf32, #tpu.memory_space<vmem>>, vector<1x4x4xf32>
    %483 = vector.shape_cast %482 : vector<1x4x4xf32> to vector<4x4xf32>
    %cst_301 = arith.constant dense<0.000000e+00> : vector<4x256xf32>
    %484 = tpu.matmul %483, %480, %cst_301 {dimension_numbers = #tpu.dot_dimension_numbers<[1], [0], [0], [1], [0, 0, 1, 1], [], []>} : vector<4x4xf32>, vector<4x256xf32>, vector<4x256xf32> -> vector<4x256xf32>
    %485 = arith.addf %481, %484 : vector<4x256xf32>
    %c0_302 = arith.constant 0 : index
    %c0_303 = arith.constant 0 : index
    %486 = vector.load %arg15[%c0_302, %c0_303] : memref<4x256xf32, #tpu.memory_space<vmem>>, vector<4x256xf32>
    tpu.vector_store %arg15[%c0_302, %c0_303], %485 {strides = array<i32>} : memref<4x256xf32, #tpu.memory_space<vmem>>, vector<4x256xf32>,
    %c0_304 = arith.constant 0 : index
    %c0_305 = arith.constant 0 : index
    %487 = vector.load %arg14[%c0_304, %c0_305] : memref<4x256xf32, #tpu.memory_space<vmem>>, vector<4x256xf32>
    %c255_i32_306 = arith.constant 255 : i32
    %488 = tpu.dynamic_rotate %487 by %c255_i32_306 dim 1 : vector<4x256xf32>, i32 -> vector<4x256xf32>
    %489 = vector.broadcast %188 : vector<1x256xf32> to vector<4x256xf32>
    %490 = arith.mulf %488, %489 : vector<4x256xf32>
    %c0_307 = arith.constant 0 : index
    %c0_308 = arith.constant 0 : index
    %491 = vector.load %arg15[%c0_307, %c0_308] : memref<4x256xf32, #tpu.memory_space<vmem>>, vector<4x256xf32>
    %c5_309 = arith.constant 5 : index
    %c0_310 = arith.constant 0 : index
    %c0_311 = arith.constant 0 : index
    %492 = vector.load %arg7[%c5_309, %c0_310, %c0_311] : memref<9x4x4xf32, #tpu.memory_space<vmem>>, vector<1x4x4xf32>
    %493 = vector.shape_cast %492 : vector<1x4x4xf32> to vector<4x4xf32>
    %cst_312 = arith.constant dense<0.000000e+00> : vector<4x256xf32>
    %494 = tpu.matmul %493, %490, %cst_312 {dimension_numbers = #tpu.dot_dimension_numbers<[1], [0], [0], [1], [0, 0, 1, 1], [], []>} : vector<4x4xf32>, vector<4x256xf32>, vector<4x256xf32> -> vector<4x256xf32>
    %495 = arith.addf %491, %494 : vector<4x256xf32>
    %c0_313 = arith.constant 0 : index
    %c0_314 = arith.constant 0 : index
    %496 = vector.load %arg15[%c0_313, %c0_314] : memref<4x256xf32, #tpu.memory_space<vmem>>, vector<4x256xf32>
    tpu.vector_store %arg15[%c0_313, %c0_314], %495 {strides = array<i32>} : memref<4x256xf32, #tpu.memory_space<vmem>>, vector<4x256xf32>,
    %c0_315 = arith.constant 0 : index
    %c0_316 = arith.constant 0 : index
    %497 = vector.load %arg14[%c0_315, %c0_316] : memref<4x256xf32, #tpu.memory_space<vmem>>, vector<4x256xf32>
    %c241_i32_317 = arith.constant 241 : i32
    %498 = tpu.dynamic_rotate %497 by %c241_i32_317 dim 1 : vector<4x256xf32>, i32 -> vector<4x256xf32>
    %499 = vector.broadcast %209 : vector<1x256xf32> to vector<4x256xf32>
    %500 = arith.mulf %498, %499 : vector<4x256xf32>
    %c0_318 = arith.constant 0 : index
    %c0_319 = arith.constant 0 : index
    %501 = vector.load %arg15[%c0_318, %c0_319] : memref<4x256xf32, #tpu.memory_space<vmem>>, vector<4x256xf32>
    %c6_320 = arith.constant 6 : index
    %c0_321 = arith.constant 0 : index
    %c0_322 = arith.constant 0 : index
    %502 = vector.load %arg7[%c6_320, %c0_321, %c0_322] : memref<9x4x4xf32, #tpu.memory_space<vmem>>, vector<1x4x4xf32>
    %503 = vector.shape_cast %502 : vector<1x4x4xf32> to vector<4x4xf32>
    %cst_323 = arith.constant dense<0.000000e+00> : vector<4x256xf32>
    %504 = tpu.matmul %503, %500, %cst_323 {dimension_numbers = #tpu.dot_dimension_numbers<[1], [0], [0], [1], [0, 0, 1, 1], [], []>} : vector<4x4xf32>, vector<4x256xf32>, vector<4x256xf32> -> vector<4x256xf32>
    %505 = arith.addf %501, %504 : vector<4x256xf32>
    %c0_324 = arith.constant 0 : index
    %c0_325 = arith.constant 0 : index
    %506 = vector.load %arg15[%c0_324, %c0_325] : memref<4x256xf32, #tpu.memory_space<vmem>>, vector<4x256xf32>
    tpu.vector_store %arg15[%c0_324, %c0_325], %505 {strides = array<i32>} : memref<4x256xf32, #tpu.memory_space<vmem>>, vector<4x256xf32>,
    %c0_326 = arith.constant 0 : index
    %c0_327 = arith.constant 0 : index
    %507 = vector.load %arg14[%c0_326, %c0_327] : memref<4x256xf32, #tpu.memory_space<vmem>>, vector<4x256xf32>
    %c240_i32_328 = arith.constant 240 : i32
    %508 = tpu.dynamic_rotate %507 by %c240_i32_328 dim 1 : vector<4x256xf32>, i32 -> vector<4x256xf32>
    %509 = vector.broadcast %230 : vector<1x256xf32> to vector<4x256xf32>
    %510 = arith.mulf %508, %509 : vector<4x256xf32>
    %c0_329 = arith.constant 0 : index
    %c0_330 = arith.constant 0 : index
    %511 = vector.load %arg15[%c0_329, %c0_330] : memref<4x256xf32, #tpu.memory_space<vmem>>, vector<4x256xf32>
    %c7_331 = arith.constant 7 : index
    %c0_332 = arith.constant 0 : index
    %c0_333 = arith.constant 0 : index
    %512 = vector.load %arg7[%c7_331, %c0_332, %c0_333] : memref<9x4x4xf32, #tpu.memory_space<vmem>>, vector<1x4x4xf32>
    %513 = vector.shape_cast %512 : vector<1x4x4xf32> to vector<4x4xf32>
    %cst_334 = arith.constant dense<0.000000e+00> : vector<4x256xf32>
    %514 = tpu.matmul %513, %510, %cst_334 {dimension_numbers = #tpu.dot_dimension_numbers<[1], [0], [0], [1], [0, 0, 1, 1], [], []>} : vector<4x4xf32>, vector<4x256xf32>, vector<4x256xf32> -> vector<4x256xf32>
    %515 = arith.addf %511, %514 : vector<4x256xf32>
    %c0_335 = arith.constant 0 : index
    %c0_336 = arith.constant 0 : index
    %516 = vector.load %arg15[%c0_335, %c0_336] : memref<4x256xf32, #tpu.memory_space<vmem>>, vector<4x256xf32>
    tpu.vector_store %arg15[%c0_335, %c0_336], %515 {strides = array<i32>} : memref<4x256xf32, #tpu.memory_space<vmem>>, vector<4x256xf32>,
    %c0_337 = arith.constant 0 : index
    %c0_338 = arith.constant 0 : index
    %517 = vector.load %arg14[%c0_337, %c0_338] : memref<4x256xf32, #tpu.memory_space<vmem>>, vector<4x256xf32>
    %c239_i32_339 = arith.constant 239 : i32
    %518 = tpu.dynamic_rotate %517 by %c239_i32_339 dim 1 : vector<4x256xf32>, i32 -> vector<4x256xf32>
    %519 = vector.broadcast %251 : vector<1x256xf32> to vector<4x256xf32>
    %520 = arith.mulf %518, %519 : vector<4x256xf32>
    %c0_340 = arith.constant 0 : index
    %c0_341 = arith.constant 0 : index
    %521 = vector.load %arg15[%c0_340, %c0_341] : memref<4x256xf32, #tpu.memory_space<vmem>>, vector<4x256xf32>
    %c8_342 = arith.constant 8 : index
    %c0_343 = arith.constant 0 : index
    %c0_344 = arith.constant 0 : index
    %522 = vector.load %arg7[%c8_342, %c0_343, %c0_344] : memref<9x4x4xf32, #tpu.memory_space<vmem>>, vector<1x4x4xf32>
    %523 = vector.shape_cast %522 : vector<1x4x4xf32> to vector<4x4xf32>
    %cst_345 = arith.constant dense<0.000000e+00> : vector<4x256xf32>
    %524 = tpu.matmul %523, %520, %cst_345 {dimension_numbers = #tpu.dot_dimension_numbers<[1], [0], [0], [1], [0, 0, 1, 1], [], []>} : vector<4x4xf32>, vector<4x256xf32>, vector<4x256xf32> -> vector<4x256xf32>
    %525 = arith.addf %521, %524 : vector<4x256xf32>
    %c0_346 = arith.constant 0 : index
    %c0_347 = arith.constant 0 : index
    %526 = vector.load %arg15[%c0_346, %c0_347] : memref<4x256xf32, #tpu.memory_space<vmem>>, vector<4x256xf32>
    tpu.vector_store %arg15[%c0_346, %c0_347], %525 {strides = array<i32>} : memref<4x256xf32, #tpu.memory_space<vmem>>, vector<4x256xf32>,
    %c0_348 = arith.constant 0 : index
    %c0_349 = arith.constant 0 : index
    %527 = vector.load %arg15[%c0_348, %c0_349] : memref<4x256xf32, #tpu.memory_space<vmem>>, vector<4x256xf32>
    %cst_350 = arith.constant dense<0.000000e+00> : vector<4xf32>
    %528 = vector.multi_reduction <add>, %527, %cst_350 [1] : vector<4x256xf32> to vector<4xf32>
    %529 = vector.shape_cast %528 : vector<4xf32> to vector<4x1xf32>
    %cst_351 = arith.constant 2.560000e+02 : f32
    %530 = vector.broadcast %cst_351 : f32 to vector<4x1xf32>
    %531 = arith.divf %529, %530 : vector<4x1xf32>
    %532 = vector.broadcast %531 : vector<4x1xf32> to vector<4x256xf32>
    %533 = arith.subf %527, %532 : vector<4x256xf32>
    %534 = arith.mulf %533, %533 : vector<4x256xf32>
    %cst_352 = arith.constant dense<0.000000e+00> : vector<4xf32>
    %535 = vector.multi_reduction <add>, %534, %cst_352 [1] : vector<4x256xf32> to vector<4xf32>
    %536 = vector.shape_cast %535 : vector<4xf32> to vector<4x1xf32>
    %cst_353 = arith.constant 2.560000e+02 : f32
    %537 = vector.broadcast %cst_353 : f32 to vector<4x1xf32>
    %538 = arith.divf %536, %537 : vector<4x1xf32>
    %539 = vector.broadcast %531 : vector<4x1xf32> to vector<4x256xf32>
    %540 = arith.subf %527, %539 : vector<4x256xf32>
    %cst_354 = arith.constant 9.99999974E-6 : f32
    %541 = vector.broadcast %cst_354 : f32 to vector<4x1xf32>
    %542 = arith.addf %538, %541 : vector<4x1xf32>
    %543 = math.rsqrt %542 : vector<4x1xf32>
    %544 = vector.broadcast %543 : vector<4x1xf32> to vector<4x256xf32>
    %545 = arith.mulf %540, %544 : vector<4x256xf32>
    %c0_355 = arith.constant 0 : index
    %c0_356 = arith.constant 0 : index
    %546 = vector.load %arg10[%c0_355, %c0_356] : memref<4x1xf32, #tpu.memory_space<vmem>>, vector<4x1xf32>
    %547 = vector.broadcast %546 : vector<4x1xf32> to vector<4x256xf32>
    %548 = arith.mulf %545, %547 : vector<4x256xf32>
    %c0_357 = arith.constant 0 : index
    %c0_358 = arith.constant 0 : index
    %549 = vector.load %arg11[%c0_357, %c0_358] : memref<4x1xf32, #tpu.memory_space<vmem>>, vector<4x1xf32>
    %550 = vector.broadcast %549 : vector<4x1xf32> to vector<4x256xf32>
    %551 = arith.addf %548, %550 : vector<4x256xf32>
    %cst_359 = arith.constant 0.000000e+00 : f32
    %552 = vector.broadcast %cst_359 : f32 to vector<4x256xf32>
    %553 = arith.cmpf oge, %551, %552 : vector<4x256xf32>
    %cst_360 = arith.constant 0.00999999977 : f32
    %554 = vector.broadcast %cst_360 : f32 to vector<4x256xf32>
    %555 = arith.mulf %554, %551 : vector<4x256xf32>
    %556 = arith.select %553, %551, %555 : vector<4x256xi1>, vector<4x256xf32>
    %c0_361 = arith.constant 0 : index
    %c0_362 = arith.constant 0 : index
    %c0_363 = arith.constant 0 : index
    %557 = vector.load %arg12[%c0_361, %c0_362, %c0_363] : memref<1x4x256xf32, #tpu.memory_space<vmem>>, vector<1x4x256xf32>
    %558 = vector.shape_cast %557 : vector<1x4x256xf32> to vector<4x256xf32>
    %559 = vector.shape_cast %556 : vector<4x256xf32> to vector<1x4x256xf32>
    tpu.vector_store %arg12[%c0_361, %c0_362, %c0_363], %559 {strides = array<i32>} : memref<1x4x256xf32, #tpu.memory_space<vmem>>, vector<1x4x256xf32>,
    return
  }
  func.func @transform_0(%arg0: i32) -> (i32, i32) {
    %c0_i32 = arith.constant 0 : i32
    %c0_i32_0 = arith.constant 0 : i32
    %c0_i32_1 = arith.constant 0 : i32
    return %c0_i32, %c0_i32_0 : i32, i32
  }
  func.func @transform_1(%arg0: i32) -> (i32, i32, i32) {
    %c0_i32 = arith.constant 0 : i32
    %c0_i32_0 = arith.constant 0 : i32
    %c0_i32_1 = arith.constant 0 : i32
    return %arg0, %c0_i32, %c0_i32_0 : i32, i32, i32
  }
  func.func @transform_2(%arg0: i32) -> (i32, i32, i32) {
    %c0_i32 = arith.constant 0 : i32
    %c0_i32_0 = arith.constant 0 : i32
    %c0_i32_1 = arith.constant 0 : i32
    return %arg0, %c0_i32, %c0_i32_0 : i32, i32, i32
  }
  func.func @transform_3(%arg0: i32) -> (i32, i32, i32) {
    %c0_i32 = arith.constant 0 : i32
    %c0_i32_0 = arith.constant 0 : i32
    %c0_i32_1 = arith.constant 0 : i32
    %c0_i32_2 = arith.constant 0 : i32
    return %c0_i32, %c0_i32_0, %c0_i32_1 : i32, i32, i32
  }
  func.func @transform_4(%arg0: i32) -> (i32, i32, i32) {
    %c0_i32 = arith.constant 0 : i32
    %c0_i32_0 = arith.constant 0 : i32
    %c0_i32_1 = arith.constant 0 : i32
    %c0_i32_2 = arith.constant 0 : i32
    return %c0_i32, %c0_i32_0, %c0_i32_1 : i32, i32, i32
  }
  func.func @transform_5(%arg0: i32) -> (i32, i32, i32) {
    %c0_i32 = arith.constant 0 : i32
    %c0_i32_0 = arith.constant 0 : i32
    %c0_i32_1 = arith.constant 0 : i32
    %c0_i32_2 = arith.constant 0 : i32
    return %c0_i32, %c0_i32_0, %c0_i32_1 : i32, i32, i32
  }
  func.func @transform_6(%arg0: i32) -> (i32, i32, i32) {
    %c0_i32 = arith.constant 0 : i32
    %c0_i32_0 = arith.constant 0 : i32
    %c0_i32_1 = arith.constant 0 : i32
    %c0_i32_2 = arith.constant 0 : i32
    return %c0_i32, %c0_i32_0, %c0_i32_1 : i32, i32, i32
  }
  func.func @transform_7(%arg0: i32) -> (i32, i32) {
    %c0_i32 = arith.constant 0 : i32
    %c0_i32_0 = arith.constant 0 : i32
    %c0_i32_1 = arith.constant 0 : i32
    return %c0_i32, %c0_i32_0 : i32, i32
  }
  func.func @transform_8(%arg0: i32) -> (i32, i32) {
    %c0_i32 = arith.constant 0 : i32
    %c0_i32_0 = arith.constant 0 : i32
    %c0_i32_1 = arith.constant 0 : i32
    return %c0_i32, %c0_i32_0 : i32, i32
  }
  func.func @transform_9(%arg0: i32) -> (i32, i32) {
    %c0_i32 = arith.constant 0 : i32
    %c0_i32_0 = arith.constant 0 : i32
    %c0_i32_1 = arith.constant 0 : i32
    return %c0_i32, %c0_i32_0 : i32, i32
  }
  func.func @transform_10(%arg0: i32) -> (i32, i32) {
    %c0_i32 = arith.constant 0 : i32
    %c0_i32_0 = arith.constant 0 : i32
    %c0_i32_1 = arith.constant 0 : i32
    return %c0_i32, %c0_i32_0 : i32, i32
  }
  func.func @transform_11(%arg0: i32) -> (i32, i32, i32) {
    %c0_i32 = arith.constant 0 : i32
    %c0_i32_0 = arith.constant 0 : i32
    %c0_i32_1 = arith.constant 0 : i32
    return %arg0, %c0_i32, %c0_i32_0 : i32, i32, i32
  }
}

</mosaic_0001>

<bundles_post_ra>
// kernel: unet_up_block_forward.1
= control target key start
LH: loop header
LB: loop body
LE: loop exit
PB: predicated region body
PF: predicated region fallthrough
CT: control target
= control target key end

     0   :  { %s3206_s17 = smov 0   ;;  %s3926_s0 = inlined_call_operand.vmem [shape: s32[4,256], index: 0, kind: input, shape index: {}]   ;;  %s3927_s1 = inlined_call_operand.vmem [shape: f32[2,8,256], index: 1, kind: input, shape index: {}]   ;;  %s3928_s2 = inlined_call_operand.vmem [shape: f32[2,4,256], index: 2, kind: input, shape index: {}]   ;;  %s3929_s3 = inlined_call_operand.vmem [shape: f32[4,4,8], index: 3, kind: input, shape index: {}]   ;;  %s3930_s4 = inlined_call_operand.vmem [shape: f32[9,4,4], index: 4, kind: input, shape index: {}]   ;;  %s3931_s5 = inlined_call_operand.vmem [shape: f32[9,4,4], index: 5, kind: input, shape index: {}]   ;;  %s3932_s6 = inlined_call_operand.vmem [shape: f32[9,4,4], index: 6, kind: input, shape index: {}]   ;;  %s3933_s7 = inlined_call_operand.vmem [shape: f32[4,1], index: 7, kind: input, shape index: {}]   ;;  %s3934_s8 = inlined_call_operand.vmem [shape: f32[4,1], index: 8, kind: input, shape index: {}]   ;;  %s3935_s9 = inlined_call_operand.vmem [shape: f32[4,1], index: 9, kind: input, shape index: {}]   ;;  %s3936_s10 = inlined_call_operand.vmem [shape: f32[4,1], index: 10, kind: input, shape index: {}]   ;;  %s3937_s11 = inlined_call_operand.vmem [shape: f32[2,4,256], index: 11, kind: output, shape index: {}]  }
   0x1 LB: > { %s2918_s18 = sadd.s32 4294967295, %s3132_s17   ;;  %p2922_p0 = scmp.ge.s32.totalorder %s3132_s17, 1  ;;  %s3132_s17 = sphi %s3206_s17, %s21_s17  }
   0x2   : > { %p347_p1 = scmp.lt.s32.totalorder %s3132_s17, 3 }
   0x4   : > { %p348_p2 = pnand %p2922_p0, %p347_p1 }
   0x5   : > { %p392_p3 = scmp.lt.s32.totalorder (!%p348_p2), %s2918_s18, 1  ;;  %s3136_s20 = smov (!%p348_p2), 17  }
   0x6   : > { %351 = sbr.rel (%p348_p2) target bundleno = 1475 (0x5c3), region = 64  ;;  %s3137_s21 = smov (!%p348_p2), 16  }
   0x7   : > { %s3139_s23 = smov (!%p348_p2), 1   ;;  %s3140_s24 = smov (!%p348_p2), 127  }
   0x8   : > { %s3141_s25 = smov (!%p348_p2), 113   ;;  %s3142_s26 = smov (!%p348_p2), 112  }
   0x9   : > { %s3143_s29 = smov (!%p348_p2), 111  }
   0xb   : > { %s3965_s18 = smov (!%p392_p3, %s2918_s18), 1  ;;  %v3134_v0 = vmov 0   ;;  %v418_v3 = vld [vmem:[%s3929_s3] sm:$0xf]  ;;  %vm419_vm0 = vcmask 64512   ;;  %v3135_v13 = vmov 0.0  }
   0xc   : > { %3118 = vset.pattern.permute.xlu1 %v3134_v0  ;;  %3119 = vset.pattern.permute.xlu0 %v3134_v0  ;;  %s3095_s19 = sshll.u32 %s3965_s18, 4  ;;  %v2935_v4 = vld [vmem:[%s3929_s3 + $0x4] sm:$0xf]  ;;  %v2939_v5 = vld [vmem:[%s3929_s3 + $0x8] sm:$0xf]  ;;  %vm659_vm9 = vcmask 1043456  }
   0xd   : > { %s396_s22 = scalar_lea.vmem %s3927_s1, %s3095_s19  ;;  %v2943_v6 = vld [vmem:[%s3929_s3 + $0xc] sm:$0xf]  ;;  %v3245_v7 = vld [vmem:[%s3926_s0] sm:$0xff]  ;;  %s3096_s14 = sshll.u32 %s3965_s18, 3 }
   0xe   : > { %v408_v1 = vld [vmem:[%s396_s22] sm:$0xff]  ;;  %v409_v2 = vld [vmem:[%s396_s22 + $0x8] sm:$0xff]  ;;  %vm474_vm1 = vcmp.eq.s32.totalorder %v3245_v7, 1  ;;  %vm410_vm2 = vcmp.eq.s32.totalorder %v3245_v7, 0  ;;  %s401_s19 = scalar_lea.vmem %s3928_s2, %s3096_s14  ;;  %vm680_vm10 = vcmp.ge.s32.totalorder %v3245_v7, 0  ;;  %vm686_vm11 = vcmp.lt.s32.totalorder %v3245_v7, 16  ;;  %s406_s27 = scalar_lea.vmem %s3937_s11, %s3096_s14 }
   0xf   : > { %438 = vmatpush.msra.mxu0 %v408_v1  ;;  %458 = vmatpush.msra.mxu1 %v409_v2  ;;  %v475_v8 = vsel %vm474_vm1, 1, %v3134_v0  ;;  %v411_v9 = vsel %vm410_vm2, 1, %v3134_v0  ;;  %v3279_v58 = vld [vmem:[%s401_s19] sm:$0xff]  ;;  %vm3305_vm13 = vmand %vm680_vm10, %vm686_vm11  ;;  %s3138_s22 = smov 15  }
  0x10   : > { %502 = vmatpush.msra.mxu2 %v408_v1  ;;  %522 = vmatpush.msra.mxu3 %v409_v2  ;;  %v2933_v10 = vrot.slane %v475_v8, 9  ;;  %v2929_v11 = vrot.slane %v411_v9, 9 }
  0x11   : > { %2931 = vmatmul.msk.f32.vlgmr.msra.gmra.mxu0 %vm419_vm0, %v418_v3  ;;  %2932 = vmatmul.msk.f32.vlgmr.msra.gmra.mxu1 %vm419_vm0, %v418_v3 }
  0x12   : > { %2936 = vmatmul.msk.f32.vlgmr.msra.gmra.mxu2 %vm419_vm0, %v2935_v4  ;;  %2937 = vmatmul.msk.f32.vlgmr.msra.gmra.mxu3 %vm419_vm0, %v2935_v4  ;;  %vm3253_vm3 = vcmp.ne.s32.totalorder %v2933_v10, 0  ;;  %vm414_vm4 = vcmp.ne.s32.totalorder %v2929_v11, 0  ;;  %v687_v4 = vsel %vm686_vm11, 1, %v3134_v0  ;;  %v3020_v11 = vld [vmem:[%s3931_s5 + $0x18] sm:$0xf] }
  0x13   : > { %561 = vmatpush.msrb.mxu0 %v408_v1  ;;  %581 = vmatpush.msrb.mxu1 %v409_v2  ;;  %vm479_vm5 = vmand %vm410_vm2, %vm3253_vm3  ;;  %v2950_v8 = vrot.slane %v687_v4, 9 }
  0x14   : > { %620 = vmatpush.msrb.mxu2 %v408_v1  ;;  %640 = vmatpush.msrb.mxu3 %v409_v2  ;;  %vm415_vm6 = vmand %vm410_vm2, %vm414_vm4  ;;  %v2934_v14 = vsel %vm479_vm5, 1.0, %v3135_v13  ;;  %v681_v2 = vsel %vm680_vm10, 1, %v3134_v0 }
  0x15   : > { %vm538_vm7 = vmand %vm474_vm1, %vm414_vm4  ;;  %v2930_v15 = vsel %vm415_vm6, 1.0, %v3135_v13  ;;  %v529_v17 = vperm.slane %v2934_v14, 6  ;;  %v528_v22 = vperm.slane %v2934_v14, 2  ;;  %v2949_v3 = vrot.slane %v681_v2, 9 }
  0x16   : > { %v2938_v19 = vsel %vm538_vm7, 1.0, %v3135_v13  ;;  %v464_v20 = vperm.slane %v2930_v15, 2  ;;  %v465_v21 = vperm.slane %v2930_v15, 6  ;;  %vm597_vm8 = vmand %vm474_vm1, %vm3253_vm3  ;;  %vm3309_vm14 = vcmp.ne.s32.totalorder %v2950_v8, 0 }
  0x17   : > { %v533_v23 = vperm.slane %v529_v17, 2  ;;  %v588_v24 = vperm.slane %v2938_v19, 6  ;;  %v2942_v25 = vsel %vm597_vm8, 1.0, %v3135_v13  ;;  %v532_v28 = vperm.slane %v528_v22, 2 }
  0x18   : > { %v468_v26 = vperm.slane %v464_v20, 2  ;;  %v469_v27 = vperm.slane %v465_v21, 2  ;;  %v587_v29 = vperm.slane %v2938_v19, 2  ;;  %v646_v34 = vperm.slane %v2942_v25, 2 }
  0x19   : > { %2940 = vmatmul.msk.f32.vlgmr.msrb.gmra.mxu0 %vm419_vm0, %v2939_v5  ;;  %2941 = vmatmul.msk.f32.vlgmr.msrb.gmra.mxu1 %vm419_vm0, %v2939_v5  ;;  %v592_v33 = vperm.slane %v588_v24, 2  ;;  %v647_v35 = vperm.slane %v2942_v25, 6  ;;  %vm3299_vm12 = vcmp.ne.s32.totalorder %v2949_v3, 0 }
  0x1a   : > { %2944 = vmatmul.msk.f32.vlgmr.msrb.gmra.mxu2 %vm419_vm0, %v2943_v6  ;;  %2945 = vmatmul.msk.f32.vlgmr.msrb.gmra.mxu3 %vm419_vm0, %v2943_v6  ;;  %v591_v40 = vperm.slane %v587_v29, 2  ;;  %v650_v44 = vperm.slane %v646_v34, 2  ;;  %vm714_vm15 = vmand %vm3305_vm13, %vm3299_vm12 }
  0x1b   : > { %v651_v45 = vperm.slane %v647_v35, 2  ;;  %vm715_vm0 = vmand %vm714_vm15, %vm3309_vm14 }
  0x1c   : > { %v2956_v15 = vsel %vm715_vm0, 1.0, %v3135_v13 }
  0x1d   : > { %v1324_v19 = vperm.slane %v2956_v15, 0 }
  0x1f   : > { %v1328_v21 = vperm.slane %v1324_v19, 0 }
  0x8e   : > { %v460_v16 = vpop.f32.mrf.mxu1  ;;  %v440_v18 = vpop.f32.mrf.mxu0 }
  0x8f   : > { %v470_v37 = vmul.f32 %v468_v26, %v440_v18  ;;  %v471_v38 = vmul.f32 %v469_v27, %v460_v16  ;;  %v1325_v16 = vperm.slane %v2956_v15, 4 }
  0x91   : > { %v1329_v20 = vperm.slane %v1325_v16, 0 }
  0x93   : > { %v1332_v22 = vrot.slane %v1329_v20, 4 }
  0x95   : > { %v504_v30 = vpop.f32.mrf.mxu2  ;;  %v524_v31 = vpop.f32.mrf.mxu3  ;;  %v3330_v25 = vsel %vm659_vm9, %v1328_v21, %v1332_v22 }
  0x96   : > { %v535_v32 = vmul.f32 %v533_v23, %v524_v31  ;;  %v583_v36 = vpop.f32.mrf.mxu1  ;;  %v534_v39 = vmul.f32 %v532_v28, %v504_v30  ;;  %v563_v41 = vpop.f32.mrf.mxu0  ;;  %v1336_v26 = vmul.f32 %v3330_v25, %v3279_v58 }
  0x97   : > { %v594_v43 = vmul.f32 %v592_v33, %v583_v36  ;;  %v593_v47 = vmul.f32 %v591_v40, %v563_v41 }
  0x98   : > { %v537_v42 = vadd.f32 %v535_v32, %v471_v38  ;;  %v536_v46 = vadd.f32 %v534_v39, %v470_v37  ;;  %v664_v38 = vadd.s32 4294967295, %v3245_v7 }
  0x9a   : > { %v596_v50 = vadd.f32 %v594_v43, %v537_v42  ;;  %v595_v53 = vadd.f32 %v593_v47, %v536_v46  ;;  %vm665_vm1 = vcmp.ge.s32.totalorder %v664_v38, 0  ;;  %vm666_vm2 = vcmp.lt.s32.totalorder %v664_v38, 16 }
  0x9b   : > { %v668_v41 = vsel %vm665_vm1, 1, %v3134_v0  ;;  %v673_v42 = vsel %vm666_vm2, 1, %v3134_v0  ;;  %vm3366_vm4 = vmand %vm665_vm1, %vm666_vm2  ;;  %vm778_vm2 = vcmask 31744  }
  0x9c   : > { %v2946_v43 = vrot.slane %v668_v41, 9  ;;  %vm685_vm7 = vmand %vm3366_vm4, %vm3299_vm12 }
  0x9d   : > { %v622_v48 = vpop.f32.mrf.mxu2  ;;  %v642_v49 = vpop.f32.mrf.mxu3  ;;  %vm691_vm10 = vmand %vm685_vm7, %vm3309_vm14 }
  0x9e   : > { %v652_v51 = vmul.f32 %v650_v44, %v622_v48  ;;  %v653_v52 = vmul.f32 %v651_v45, %v642_v49  ;;  %v2947_v44 = vrot.slane %v673_v42, 9  ;;  %vm3362_vm3 = vcmp.ne.s32.totalorder %v2946_v43, 0  ;;  %v3010_v49 = vld [vmem:[%s3931_s5 + $0x14] sm:$0xf] }
  0x9f   : > { %vm672_vm5 = vmand %vm3366_vm4, %vm3362_vm3 }
  0xa0   : > { %v655_v54 = vadd.f32 %v653_v52, %v596_v50  ;;  %v654_v55 = vadd.f32 %v652_v51, %v595_v53  ;;  %vm3374_vm6 = vcmp.ne.s32.totalorder %v2947_v44, 0  ;;  %v747_v51 = vlaneseq }
  0xa1   : > { %vm677_vm8 = vmand %vm672_vm5, %vm3374_vm6 }
  0xa2   : > { %v658_v56 = vrot.slane %v655_v54, 4  ;;  %v2948_v54 = vsel %vm677_vm8, 1.0, %v3135_v13 }
  0xa4   : > { %v3271_v57 = vsel %vm659_vm9, %v654_v55, %v658_v56  ;;  %v2951_v56 = vsel %vm691_vm10, 1.0, %v3135_v13 }
  0xa5   : > { %738 = vst [vmem:[#allocation1] ss:$2 sm:$0xff] %v3271_v57  ;;  %v1335_v29 = vmul.f32 %v3330_v25, %v3271_v57 }
  0xac   : > { %v739_v59 = vld.sshfl [vmem:[#allocation1] sm:$0xff pattern:$0x75316420]  ;;  %v740_v60 = vld.sshfl [vmem:[#allocation1 + $0x8] sm:$0xff pattern:$0x75316420] }
  0xad   : > { %762 = vst [vmem:[#allocation1] ss:$2 sm:$0xff] %v3279_v58  ;;  %743 = vrot.lane.b32.xlu0 %v739_v59, %s3136_s20  ;;  %v3391_v59 = vand.u32 127, %v747_v51 }
  0xaf   : > { %vm895_vm11 = vcmp.lt.s32.totalorder %v3391_v59, 16  ;;  %vm749_vm0 = vcmp.lt.s32.totalorder %v3391_v59, 17 }
  0xb4   : > { %v763_v61 = vld.sshfl [vmem:[#allocation1] sm:$0xff pattern:$0x75316420]  ;;  %v764_v62 = vld.sshfl [vmem:[#allocation1 + $0x8] sm:$0xff pattern:$0x75316420] }
  0xb5   : > { %886 = vst [vmem:[#allocation1] ss:$2 sm:$0xff] %v3271_v57  ;;  %745 = vrot.lane.b32.xlu0 %v740_v60, %s3136_s20  ;;  %767 = vrot.lane.b32.xlu1 %v763_v61, %s3136_s20  ;;  %v3394_v60 = vadd.s32 1, %v3245_v7  ;;  %v753_v61 = vperm.slane %v2948_v54, 0 }
  0xb7   : > { %vm695_vm15 = vcmp.ge.s32.totalorder %v3394_v60, 0  ;;  %v3402_v7 = vperm.slane %v753_v61, 0  ;;  %vm701_vm1 = vcmp.lt.s32.totalorder %v3394_v60, 16 }
  0xb8   : > { %v702_v19 = vsel %vm701_vm1, 1, %v3134_v0 }
  0xbc   : > { %v887_v63 = vld.sshfl [vmem:[#allocation1] sm:$0xff pattern:$0x75316420]  ;;  %v888_v1 = vld.sshfl [vmem:[#allocation1 + $0x8] sm:$0xff pattern:$0x75316420] }
  0xbd   : > { %907 = vst [vmem:[#allocation1] ss:$2 sm:$0xff] %v3279_v58  ;;  %891 = vrot.lane.b32.xlu2 %v887_v63, %s3137_s21  ;;  %769 = vrot.lane.b32.xlu1 %v764_v62, %s3136_s20  ;;  %v754_v62 = vperm.slane %v2948_v54, 4  ;;  %v899_v63 = vperm.slane %v2951_v56, 0  ;;  %v2970_v54 = vld [vmem:[%s3931_s5 + $0x4] sm:$0xf] }
  0xc4   : > { %v908_v5 = vld.sshfl [vmem:[#allocation1] sm:$0xff pattern:$0x75316420]  ;;  %v909_v6 = vld.sshfl [vmem:[#allocation1 + $0x8] sm:$0xff pattern:$0x75316420] }
  0xc5   : > { %1032 = vst [vmem:[#allocation1] ss:$2 sm:$0xff] %v3271_v57  ;;  %893 = vrot.lane.b32.xlu2 %v888_v1, %s3137_s21  ;;  %912 = vrot.lane.b32.xlu0 %v908_v5, %s3137_s21  ;;  %v900_v1 = vperm.slane %v2951_v56, 4  ;;  %v3404_v5 = vperm.slane %v754_v62, 0 }
  0xc6   : > { %914 = vrot.lane.b32.xlu1 %v909_v6, %s3137_s21  ;;  %v3407_v6 = vperm.slane %v899_v63, 0 }
  0xc7   : > { %v3409_v8 = vperm.slane %v900_v1, 0 }
  0xcc   : > { %v1033_v12 = vld.sshfl [vmem:[#allocation1] sm:$0xff pattern:$0x75316420]  ;;  %v1034_v14 = vld.sshfl [vmem:[#allocation1 + $0x8] sm:$0xff pattern:$0x75316420] }
  0xcd   : > { %1053 = vst [vmem:[#allocation1] ss:$2 sm:$0xff] %v3279_v58  ;;  %1039 = vrot.lane.b32.xlu0 %v1034_v14, %s3138_s22  ;;  %1037 = vrot.lane.b32.xlu2 %v1033_v12, %s3138_s22  ;;  %v696_v12 = vsel %vm695_vm15, 1, %v3134_v0 }
  0xce   : > { %v2952_v22 = vrot.slane %v696_v12, 9 }
  0xd0   : > { %vm3439_vm5 = vcmp.ne.s32.totalorder %v2952_v22, 0 }
  0xd1   : > { %vm700_vm7 = vmand %vm3366_vm4, %vm3439_vm5  ;;  %vm3939_vm4 = vcmp.lt.s32.totalorder %v3391_v59, 15 }
  0xd4   : > { %v1054_v17 = vld.sshfl [vmem:[#allocation1] sm:$0xff pattern:$0x75316420]  ;;  %v1055_v18 = vld.sshfl [vmem:[#allocation1 + $0x8] sm:$0xff pattern:$0x75316420] }
  0xd5   : > { %1178 = vst [vmem:[#allocation1] ss:$2 sm:$0xff] %v3271_v57  ;;  %1058 = vrot.lane.b32.xlu1 %v1054_v17, %s3138_s22  ;;  %1060 = vrot.lane.b32.xlu2 %v1055_v18, %s3138_s22 }
  0xdc   : > { %v1179_v23 = vld.sshfl [vmem:[#allocation1] sm:$0xff pattern:$0x75316420]  ;;  %v1180_v24 = vld.sshfl [vmem:[#allocation1 + $0x8] sm:$0xff pattern:$0x75316420] }
  0xdd   : > { %1199 = vst [vmem:[#allocation1] ss:$2 sm:$0xff] %v3279_v58  ;;  %1185 = vrot.lane.b32.xlu1 %v1180_v24, %s3139_s23  ;;  %1183 = vrot.lane.b32.xlu0 %v1179_v23, %s3139_s23 }
  0xe4   : > { %v1200_v27 = vld.sshfl [vmem:[#allocation1] sm:$0xff pattern:$0x75316420]  ;;  %v1201_v28 = vld.sshfl [vmem:[#allocation1 + $0x8] sm:$0xff pattern:$0x75316420] }
  0xe5   : > { %1343 = vst [vmem:[#allocation1] ss:$2 sm:$0xff] %v1336_v26  ;;  %1206 = vrot.lane.b32.xlu0 %v1201_v28, %s3139_s23  ;;  %1204 = vrot.lane.b32.xlu2 %v1200_v27, %s3139_s23  ;;  %v2953_v26 = vrot.slane %v702_v19, 9  ;;  %v776_v27 = vld [vmem:[%s3930_s4] sm:$0xf] }
  0xe7   : > { %vm3449_vm8 = vcmp.ne.s32.totalorder %v2953_v26, 0 }
  0xe8   : > { %vm706_vm10 = vmand %vm700_vm7, %vm3449_vm8 }
  0xe9   : > { %v2954_v43 = vsel %vm706_vm10, 1.0, %v3135_v13  ;;  %vm710_vm7 = vmand %vm3305_vm13, %vm3362_vm3 }
  0xea   : > { %v1046_v51 = vperm.slane %v2954_v43, 4  ;;  %vm711_vm10 = vmand %vm710_vm7, %vm3374_vm6  ;;  %vm3938_vm7 = vcmp.lt.s32.totalorder %v3391_v59, 1 }
  0xeb   : > { %v2955_v12 = vsel %vm711_vm10, 1.0, %v3135_v13  ;;  %vm718_vm10 = vmand %vm3305_vm13, %vm3439_vm5 }
  0xec   : > { %v3338_v30 = vld.sshfl [vmem:[#allocation1] sm:$0xff pattern:$0x75316420]  ;;  %v3340_v31 = vld.sshfl [vmem:[#allocation1 + $0x8] sm:$0xff pattern:$0x75316420]  ;;  %vm3592_vm13 = vmand %vm695_vm15, %vm701_vm1 }
  0xed   : > { %1394 = vst [vmem:[#allocation1] ss:$2 sm:$0xff] %v1335_v29  ;;  %v3490_v56 = vperm.slane %v1046_v51, 0  ;;  %v1191_v19 = vperm.slane %v2955_v12, 0 }
  0xef   : > { %v3528_v22 = vperm.slane %v1191_v19, 0 }
  0xf4   : > { %v3342_v32 = vld.sshfl [vmem:[#allocation1] sm:$0xff pattern:$0x75316420]  ;;  %v3344_v33 = vld.sshfl [vmem:[#allocation1 + $0x8] sm:$0xff pattern:$0x75316420] }
  0xf5   : > { %1453 = vst [vmem:[#allocation1] ss:$2 sm:$0xff] %v3271_v57 }
  0xfc   : > { %v1455_v34 = vld.sshfl [vmem:[#allocation1 + $0x8] sm:$0xff pattern:$0x75316420]  ;;  %v1454_v35 = vld.sshfl [vmem:[#allocation1] sm:$0xff pattern:$0x75316420] }
  0xfd   : > { %1460 = vrot.lane.b32.xlu2 %v1455_v34, %s3140_s24  ;;  %1458 = vrot.lane.b32.xlu1 %v1454_v35, %s3140_s24  ;;  %1474 = vst [vmem:[#allocation1] ss:$2 sm:$0xff] %v3279_v58  ;;  %v3030_v35 = vld [vmem:[%s3931_s5 + $0x1c] sm:$0xf] }
 0x104   : > { %v1476_v36 = vld.sshfl [vmem:[#allocation1 + $0x8] sm:$0xff pattern:$0x75316420]  ;;  %v1475_v37 = vld.sshfl [vmem:[#allocation1] sm:$0xff pattern:$0x75316420] }
 0x105   : > { %1481 = vrot.lane.b32.xlu1 %v1476_v36, %s3140_s24  ;;  %1479 = vrot.lane.b32.xlu0 %v1475_v37, %s3140_s24  ;;  %1599 = vst [vmem:[#allocation1] ss:$2 sm:$0xff] %v3271_v57 }
 0x10c   : > { %v1601_v39 = vld.sshfl [vmem:[#allocation1 + $0x8] sm:$0xff pattern:$0x75316420]  ;;  %v1600_v40 = vld.sshfl [vmem:[#allocation1] sm:$0xff pattern:$0x75316420] }
 0x10d   : > { %1606 = vrot.lane.b32.xlu0 %v1601_v39, %s3141_s25  ;;  %1604 = vrot.lane.b32.xlu2 %v1600_v40, %s3141_s25  ;;  %1620 = vst [vmem:[#allocation1] ss:$2 sm:$0xff] %v3279_v58  ;;  %v2969_v39 = vld [vmem:[%s3930_s4 + $0x4] sm:$0xf]  ;;  %v777_v40 = vld [vmem:[%s3931_s5] sm:$0xf] }
 0x114   : > { %v1621_v45 = vld.sshfl [vmem:[#allocation1] sm:$0xff pattern:$0x75316420]  ;;  %v1622_v46 = vld.sshfl [vmem:[#allocation1 + $0x8] sm:$0xff pattern:$0x75316420] }
 0x115   : > { %1625 = vrot.lane.b32.xlu1 %v1621_v45, %s3141_s25  ;;  %1627 = vrot.lane.b32.xlu2 %v1622_v46, %s3141_s25  ;;  %1745 = vst [vmem:[#allocation1] ss:$2 sm:$0xff] %v3271_v57 }
 0x117   : > { %v892_v50 = vpop.permute.xlu2 %891 }
 0x11c   : > { %v1747_v52 = vld.sshfl [vmem:[#allocation1 + $0x8] sm:$0xff pattern:$0x75316420]  ;;  %v1746_v53 = vld.sshfl [vmem:[#allocation1] sm:$0xff pattern:$0x75316420] }
 0x11d   : > { %1752 = vrot.lane.b32.xlu1 %v1747_v52, %s3142_s26  ;;  %1750 = vrot.lane.b32.xlu0 %v1746_v53, %s3142_s26  ;;  %1766 = vst [vmem:[#allocation1] ss:$2 sm:$0xff] %v3279_v58 }
 0x11f   : > { %v744_v55 = vpop.permute.xlu0 %743  ;;  %v894_v2 = vpop.permute.xlu2 %893 }
 0x120   : > { %v896_v14 = vsel %vm895_vm11, %v892_v50, %v894_v2 }
 0x121   : > { %v906_v24 = vmul.f32 %v3409_v8, %v896_v14 }
 0x124   : > { %v1768_v3 = vld.sshfl [vmem:[#allocation1 + $0x8] sm:$0xff pattern:$0x75316420]  ;;  %v1767_v4 = vld.sshfl [vmem:[#allocation1] sm:$0xff pattern:$0x75316420] }
 0x125   : > { %1773 = vrot.lane.b32.xlu0 %v1768_v3, %s3142_s26  ;;  %1771 = vrot.lane.b32.xlu2 %v1767_v4, %s3142_s26  ;;  %1891 = vst [vmem:[#allocation1] ss:$2 sm:$0xff] %v3271_v57  ;;  %v897_v57 = vsel %vm895_vm11, %v894_v2, %v892_v50  ;;  %v1045_v50 = vperm.slane %v2954_v43, 0  ;;  %v2979_v4 = vld [vmem:[%s3930_s4 + $0x8] sm:$0xf] }
 0x126   : > { %v905_v23 = vmul.f32 %v3407_v6, %v897_v57 }
 0x127   : > { %v746_v15 = vpop.permute.xlu0 %745  ;;  %v768_v18 = vpop.permute.xlu1 %767 }
 0x128   : > { %v750_v16 = vsel %vm749_vm0, %v744_v55, %v746_v15  ;;  %v751_v17 = vsel %vm749_vm0, %v746_v15, %v744_v55  ;;  %v3488_v55 = vperm.slane %v1045_v50, 0  ;;  %v1038_v61 = vpop.permute.xlu2 %1037 }
 0x129   : > { %v759_v20 = vmul.f32 %v3402_v7, %v751_v17  ;;  %v760_v21 = vmul.f32 %v3404_v5, %v750_v16 }
 0x12b   : > { %2965 = vmatpush.msk.msra.mxu2 %vm659_vm9, %v759_v20  ;;  %2967 = vmatpush.msk.msra.mxu3 %vm659_vm9, %v760_v21  ;;  %v1192_v20 = vperm.slane %v2955_v12, 4  ;;  %v2980_v21 = vld [vmem:[%s3931_s5 + $0x8] sm:$0xf] }
 0x12c   : > { %v1893_v0 = vld.sshfl [vmem:[#allocation1 + $0x8] sm:$0xff pattern:$0x75316420]  ;;  %v1892_v28 = vld.sshfl [vmem:[#allocation1] sm:$0xff pattern:$0x75316420]  ;;  %2966 = vmatmul.msk.f32.vlgmr.msra.gmra.mxu2 %vm778_vm2, %v776_v27  ;;  %2968 = vmatmul.msk.f32.vlgmr.msra.gmra.mxu3 %vm778_vm2, %v776_v27 }
 0x12d   : > { %2975 = vmatpush.msk.msrb.mxu2 %vm659_vm9, %v905_v23  ;;  %2977 = vmatpush.msk.msrb.mxu3 %vm659_vm9, %v906_v24  ;;  %1912 = vst [vmem:[#allocation1] ss:$2 sm:$0xff] %v3279_v58  ;;  %v3530_v23 = vperm.slane %v1192_v20, 0  ;;  %v3019_v20 = vld [vmem:[%s3930_s4 + $0x18] sm:$0xf] }
 0x12e   : > { %1898 = vrot.lane.b32.xlu2 %v1893_v0, %s3143_s29  ;;  %1896 = vrot.lane.b32.xlu1 %v1892_v28, %s3143_s29 }
 0x12f   : > { %v770_v34 = vpop.permute.xlu1 %769 }
 0x130   : > { %v771_v58 = vsel %vm749_vm0, %v768_v18, %v770_v34  ;;  %v772_v36 = vsel %vm749_vm0, %v770_v34, %v768_v18  ;;  %v1061_v14 = vpop.permute.xlu2 %1060 }
 0x131   : > { %v773_v37 = vmul.f32 %v772_v36, %v3402_v7  ;;  %v774_v38 = vmul.f32 %v771_v58, %v3404_v5  ;;  %v2989_v58 = vld [vmem:[%s3930_s4 + $0xc] sm:$0xf] }
 0x133   : > { %2963 = vmatpush.msk.msra.mxu1 %vm659_vm9, %v774_v38  ;;  %2961 = vmatpush.msk.msra.mxu0 %vm659_vm9, %v773_v37 }
 0x134   : > { %v1914_v41 = vld.sshfl [vmem:[#allocation1 + $0x8] sm:$0xff pattern:$0x75316420]  ;;  %v1913_v42 = vld.sshfl [vmem:[#allocation1] sm:$0xff pattern:$0x75316420]  ;;  %2976 = vmatmul.msk.f32.vlgmr.msrb.gmra.mxu2 %vm778_vm2, %v2969_v39  ;;  %2978 = vmatmul.msk.f32.vlgmr.msrb.gmra.mxu3 %vm778_vm2, %v2969_v39 }
 0x135   : > { %1917 = vrot.lane.b32.xlu0 %v1913_v42, %s3143_s29  ;;  %2964 = vmatmul.msk.f32.vlgmr.msra.gmra.mxu1 %vm778_vm2, %v777_v40  ;;  %v3000_v42 = vld [vmem:[%s3931_s5 + $0x10] sm:$0xf] }
 0x136   : > { %1919 = vrot.lane.b32.xlu1 %v1914_v41, %s3143_s29  ;;  %2962 = vmatmul.msk.f32.vlgmr.msra.gmra.mxu0 %vm778_vm2, %v777_v40 }
 0x137   : > { %v913_v44 = vpop.permute.xlu0 %912 }
 0x138   : > { %v915_v45 = vpop.permute.xlu1 %914 }
 0x139   : > { %v916_v46 = vsel %vm895_vm11, %v913_v44, %v915_v45  ;;  %v917_v48 = vsel %vm895_vm11, %v915_v45, %v913_v44 }
 0x13a   : > { %v918_v52 = vmul.f32 %v917_v48, %v3407_v6  ;;  %v919_v53 = vmul.f32 %v916_v46, %v3409_v8 }
 0x13c   : > { %2973 = vmatpush.msk.msrb.mxu1 %vm659_vm9, %v919_v53  ;;  %2971 = vmatpush.msk.msrb.mxu0 %vm659_vm9, %v918_v52  ;;  %v3009_v53 = vld [vmem:[%s3930_s4 + $0x14] sm:$0xf] }
 0x13d   : > { %2974 = vmatmul.msk.f32.vlgmr.msrb.gmra.mxu1 %vm778_vm2, %v2970_v54 }
 0x13e   : > { %2972 = vmatmul.msk.f32.vlgmr.msrb.gmra.mxu0 %vm778_vm2, %v2970_v54 }
 0x13f   : > { %v1040_v62 = vpop.permute.xlu0 %1039  ;;  %v1205_v36 = vpop.permute.xlu2 %1204 }
 0x140   : > { %v1042_v63 = vsel %vm3939_vm4, %v1038_v61, %v1040_v62  ;;  %v1043_v1 = vsel %vm3939_vm4, %v1040_v62, %v1038_v61 }
 0x141   : > { %v1051_v2 = vmul.f32 %v3488_v55, %v1043_v1  ;;  %v1052_v3 = vmul.f32 %v3490_v56, %v1042_v63 }
 0x143   : > { %2985 = vmatpush.msk.msra.mxu2 %vm659_vm9, %v1051_v2  ;;  %2987 = vmatpush.msk.msra.mxu3 %vm659_vm9, %v1052_v3 }
 0x144   : > { %2986 = vmatmul.msk.f32.vlgmr.msra.gmra.mxu2 %vm778_vm2, %v2979_v4  ;;  %2988 = vmatmul.msk.f32.vlgmr.msra.gmra.mxu3 %vm778_vm2, %v2979_v4 }
 0x147   : > { %v1059_v57 = vpop.permute.xlu1 %1058 }
 0x148   : > { %v1062_v15 = vsel %vm3939_vm4, %v1059_v57, %v1061_v14  ;;  %v1063_v16 = vsel %vm3939_vm4, %v1061_v14, %v1059_v57  ;;  %vm1462_vm4 = vcmp.lt.s32.totalorder %v3391_v59, 127 }
 0x149   : > { %v1064_v17 = vmul.f32 %v1063_v16, %v3488_v55  ;;  %v1065_v18 = vmul.f32 %v1062_v15, %v3490_v56 }
 0x14b   : > { %2983 = vmatpush.msk.msra.mxu1 %vm659_vm9, %v1065_v18  ;;  %2981 = vmatpush.msk.msra.mxu0 %vm659_vm9, %v1064_v17 }
 0x14c   : > { %2984 = vmatmul.msk.f32.vlgmr.msra.gmra.mxu1 %vm778_vm2, %v2980_v21  ;;  %2982 = vmatmul.msk.f32.vlgmr.msra.gmra.mxu0 %vm778_vm2, %v2980_v21 }
 0x14f   : > { %v1186_v24 = vpop.permute.xlu1 %1185  ;;  %v1184_v26 = vpop.permute.xlu0 %1183 }
 0x150   : > { %v1188_v27 = vsel %vm3938_vm7, %v1184_v26, %v1186_v24  ;;  %v1189_v0 = vsel %vm3938_vm7, %v1186_v24, %v1184_v26 }
 0x151   : > { %v1197_v28 = vmul.f32 %v3528_v22, %v1189_v0  ;;  %v1198_v34 = vmul.f32 %v3530_v23, %v1188_v27 }
 0x153   : > { %2995 = vmatpush.msk.msrb.mxu2 %vm659_vm9, %v1197_v28  ;;  %2997 = vmatpush.msk.msrb.mxu3 %vm659_vm9, %v1198_v34 }
 0x154   : > { %2998 = vmatmul.msk.f32.vlgmr.msrb.gmra.mxu3 %vm778_vm2, %v2989_v58  ;;  %2996 = vmatmul.msk.f32.vlgmr.msrb.gmra.mxu2 %vm778_vm2, %v2989_v58 }
 0x155   : > { %3005 = vmatpush.msk.msra.mxu2 %vm659_vm9, %v3342_v32  ;;  %3007 = vmatpush.msk.msra.mxu3 %vm659_vm9, %v3344_v33  ;;  %v2990_v32 = vld [vmem:[%s3931_s5 + $0xc] sm:$0xf]  ;;  %v2999_v33 = vld [vmem:[%s3930_s4 + $0x10] sm:$0xf] }
 0x157   : > { %v1207_v37 = vpop.permute.xlu0 %1206  ;;  %v1461_v46 = vpop.permute.xlu2 %1460 }
 0x158   : > { %v1208_v38 = vsel %vm3938_vm7, %v1205_v36, %v1207_v37  ;;  %v1209_v39 = vsel %vm3938_vm7, %v1207_v37, %v1205_v36  ;;  %vm719_vm7 = vmand %vm718_vm10, %vm3449_vm8 }
 0x159   : > { %v1210_v40 = vmul.f32 %v1209_v39, %v3528_v22  ;;  %v1211_v41 = vmul.f32 %v1208_v38, %v3530_v23 }
 0x15b   : > { %2993 = vmatpush.msk.msrb.mxu1 %vm659_vm9, %v1211_v41  ;;  %2991 = vmatpush.msk.msrb.mxu0 %vm659_vm9, %v1210_v40 }
 0x15c   : > { %2994 = vmatmul.msk.f32.vlgmr.msrb.gmra.mxu1 %vm778_vm2, %v2990_v32  ;;  %2992 = vmatmul.msk.f32.vlgmr.msrb.gmra.mxu0 %vm778_vm2, %v2990_v32 }
 0x15d   : > { %3008 = vmatmul.msk.f32.vlgmr.msra.gmra.mxu3 %vm778_vm2, %v2999_v33  ;;  %3006 = vmatmul.msk.f32.vlgmr.msra.gmra.mxu2 %vm778_vm2, %v2999_v33 }
 0x15e   : > { %3003 = vmatpush.msk.msra.mxu1 %vm659_vm9, %v3340_v31  ;;  %3001 = vmatpush.msk.msra.mxu0 %vm659_vm9, %v3338_v30  ;;  %v2957_v31 = vsel %vm719_vm7, 1.0, %v3135_v13  ;;  %vm723_vm7 = vmand %vm3592_vm13, %vm3362_vm3  ;;  %vm1608_vm3 = vcmp.lt.s32.totalorder %v3391_v59, 113 }
 0x15f   : > { %v1466_v43 = vperm.slane %v2957_v31, 0  ;;  %v1467_v30 = vperm.slane %v2957_v31, 4  ;;  %vm724_vm15 = vmand %vm723_vm7, %vm3374_vm6 }
 0x160   : > { %v2958_v47 = vsel %vm724_vm15, 1.0, %v3135_v13  ;;  %vm727_vm6 = vmand %vm3592_vm13, %vm3299_vm12  ;;  %vm1754_vm12 = vcmp.lt.s32.totalorder %v3391_v59, 112 }
 0x161   : > { %v3584_v44 = vperm.slane %v1466_v43, 0  ;;  %v3586_v10 = vperm.slane %v1467_v30, 0  ;;  %v1612_v3 = vperm.slane %v2958_v47, 0  ;;  %v1613_v4 = vperm.slane %v2958_v47, 4  ;;  %vm728_vm1 = vmand %vm727_vm6, %vm3309_vm14 }
 0x162   : > { %v2959_v9 = vsel %vm728_vm1, 1.0, %v3135_v13  ;;  %vm731_vm14 = vmand %vm3592_vm13, %vm3439_vm5  ;;  %vm1900_vm5 = vcmp.lt.s32.totalorder %v3391_v59, 111  ;;  %vm3962_vm1 = vcmp.lt.s32.totalorder %v3391_v59, 1 }
 0x163   : > { %v3630_v12 = vperm.slane %v1612_v3, 0  ;;  %v3632_v14 = vperm.slane %v1613_v4, 0  ;;  %v1758_v34 = vperm.slane %v2959_v9, 0  ;;  %v1759_v58 = vperm.slane %v2959_v9, 4  ;;  %vm732_vm10 = vmand %vm731_vm14, %vm3449_vm8 }
 0x164   : > { %3004 = vmatmul.msk.f32.vlgmr.msra.gmra.mxu1 %vm778_vm2, %v3000_v42  ;;  %3002 = vmatmul.msk.f32.vlgmr.msra.gmra.mxu0 %vm778_vm2, %v3000_v42  ;;  %v3029_v42 = vld [vmem:[%s3930_s4 + $0x1c] sm:$0xf]  ;;  %v2960_v31 = vsel %vm732_vm10, 1.0, %v3135_v13  ;;  %vm3963_vm14 = vmmov %vm3962_vm1 }
 0x165   : > { %v3668_v36 = vperm.slane %v1758_v34, 0  ;;  %v3670_v37 = vperm.slane %v1759_v58, 0 }
 0x167   : > { %v1605_v57 = vpop.permute.xlu2 %1604 }
 0x16f   : > { %v1459_v48 = vpop.permute.xlu1 %1458  ;;  %v1628_v21 = vpop.permute.xlu2 %1627 }
 0x170   : > { %v1463_v50 = vsel %vm1462_vm4, %v1459_v48, %v1461_v46  ;;  %v1464_v51 = vsel %vm1462_vm4, %v1461_v46, %v1459_v48 }
 0x171   : > { %v1472_v52 = vmul.f32 %v3584_v44, %v1463_v50  ;;  %v1473_v60 = vmul.f32 %v3586_v10, %v1464_v51  ;;  %v1904_v50 = vperm.slane %v2960_v31, 0  ;;  %v1905_v51 = vperm.slane %v2960_v31, 4 }
 0x173   : > { %3015 = vmatpush.msk.msrb.mxu2 %vm659_vm9, %v1472_v52  ;;  %3017 = vmatpush.msk.msrb.mxu3 %vm659_vm9, %v1473_v60  ;;  %v3706_v13 = vperm.slane %v1904_v50, 0  ;;  %v3708_v52 = vperm.slane %v1905_v51, 0 }
 0x174   : > { %3018 = vmatmul.msk.f32.vlgmr.msrb.gmra.mxu3 %vm778_vm2, %v3009_v53  ;;  %3016 = vmatmul.msk.f32.vlgmr.msrb.gmra.mxu2 %vm778_vm2, %v3009_v53 }
 0x177   : > { %v1482_v54 = vpop.permute.xlu1 %1481  ;;  %v1480_v61 = vpop.permute.xlu0 %1479 }
 0x178   : > { %v1483_v62 = vsel %vm1462_vm4, %v1480_v61, %v1482_v54  ;;  %v1484_v63 = vsel %vm1462_vm4, %v1482_v54, %v1480_v61 }
 0x179   : > { %v1485_v1 = vmul.f32 %v1483_v62, %v3584_v44  ;;  %v1486_v2 = vmul.f32 %v1484_v63, %v3586_v10  ;;  %v3039_v63 = vld [vmem:[%s3930_s4 + $0x20] sm:$0xf] }
 0x17b   : > { %3013 = vmatpush.msk.msrb.mxu1 %vm659_vm9, %v1486_v2  ;;  %3011 = vmatpush.msk.msrb.mxu0 %vm659_vm9, %v1485_v1 }
 0x17c   : > { %3014 = vmatmul.msk.f32.vlgmr.msrb.gmra.mxu1 %vm778_vm2, %v3010_v49  ;;  %3012 = vmatmul.msk.f32.vlgmr.msrb.gmra.mxu0 %vm778_vm2, %v3010_v49 }
 0x17f   : > { %v1607_v15 = vpop.permute.xlu0 %1606  ;;  %v1772_v29 = vpop.permute.xlu2 %1771 }
 0x180   : > { %v1609_v16 = vsel %vm1608_vm3, %v1605_v57, %v1607_v15  ;;  %v1610_v17 = vsel %vm1608_vm3, %v1607_v15, %v1605_v57  ;;  %v3040_v15 = vld [vmem:[%s3931_s5 + $0x20] sm:$0xf] }
 0x181   : > { %v1618_v18 = vmul.f32 %v3630_v12, %v1609_v16  ;;  %v1619_v19 = vmul.f32 %v3632_v14, %v1610_v17 }
 0x183   : > { %3025 = vmatpush.msk.msra.mxu2 %vm659_vm9, %v1618_v18  ;;  %3027 = vmatpush.msk.msra.mxu3 %vm659_vm9, %v1619_v19 }
 0x184   : > { %3028 = vmatmul.msk.f32.vlgmr.msra.gmra.mxu3 %vm778_vm2, %v3019_v20  ;;  %3026 = vmatmul.msk.f32.vlgmr.msra.gmra.mxu2 %vm778_vm2, %v3019_v20 }
 0x187   : > { %v1626_v24 = vpop.permute.xlu1 %1625 }
 0x188   : > { %v1629_v26 = vsel %vm1608_vm3, %v1626_v24, %v1628_v21  ;;  %v1630_v27 = vsel %vm1608_vm3, %v1628_v21, %v1626_v24  ;;  %v1899_v60 = vpop.permute.xlu2 %1898 }
 0x189   : > { %v1631_v0 = vmul.f32 %v1629_v26, %v3630_v12  ;;  %v1632_v28 = vmul.f32 %v1630_v27, %v3632_v14 }
 0x18b   : > { %3023 = vmatpush.msk.msra.mxu1 %vm659_vm9, %v1632_v28  ;;  %3021 = vmatpush.msk.msra.mxu0 %vm659_vm9, %v1631_v0 }
 0x18c   : > { %3024 = vmatmul.msk.f32.vlgmr.msra.gmra.mxu1 %vm778_vm2, %v3020_v11  ;;  %3022 = vmatmul.msk.f32.vlgmr.msra.gmra.mxu0 %vm778_vm2, %v3020_v11 }
 0x18f   : > { %v1753_v38 = vpop.permute.xlu1 %1752  ;;  %v1751_v39 = vpop.permute.xlu0 %1750 }
 0x190   : > { %v1755_v40 = vsel %vm1754_vm12, %v1751_v39, %v1753_v38  ;;  %v1756_v41 = vsel %vm1754_vm12, %v1753_v38, %v1751_v39 }
 0x191   : > { %v1764_v32 = vmul.f32 %v3668_v36, %v1755_v40  ;;  %v1765_v33 = vmul.f32 %v3670_v37, %v1756_v41 }
 0x193   : > { %3035 = vmatpush.msk.msrb.mxu2 %vm659_vm9, %v1764_v32  ;;  %3037 = vmatpush.msk.msrb.mxu3 %vm659_vm9, %v1765_v33 }
 0x194   : > { %3038 = vmatmul.msk.f32.vlgmr.msrb.gmra.mxu3 %vm778_vm2, %v3029_v42  ;;  %3036 = vmatmul.msk.f32.vlgmr.msrb.gmra.mxu2 %vm778_vm2, %v3029_v42 }
 0x197   : > { %v1774_v43 = vpop.permute.xlu0 %1773 }
 0x198   : > { %v1775_v30 = vsel %vm1754_vm12, %v1772_v29, %v1774_v43  ;;  %v1776_v45 = vsel %vm1754_vm12, %v1774_v43, %v1772_v29 }
 0x199   : > { %v1777_v46 = vmul.f32 %v1775_v30, %v3668_v36  ;;  %v1778_v48 = vmul.f32 %v1776_v45, %v3670_v37 }
 0x19b   : > { %3033 = vmatpush.msk.msrb.mxu1 %vm659_vm9, %v1778_v48  ;;  %3031 = vmatpush.msk.msrb.mxu0 %vm659_vm9, %v1777_v46 }
 0x19c   : > { %3034 = vmatmul.msk.f32.vlgmr.msrb.gmra.mxu1 %vm778_vm2, %v3030_v35  ;;  %3032 = vmatmul.msk.f32.vlgmr.msrb.gmra.mxu0 %vm778_vm2, %v3030_v35 }
 0x1a0   : > { %v1897_v53 = vpop.permute.xlu1 %1896 }
 0x1a1   : > { %v1901_v47 = vsel %vm1900_vm5, %v1897_v53, %v1899_v60  ;;  %v1902_v54 = vsel %vm1900_vm5, %v1899_v60, %v1897_v53 }
 0x1a2   : > { %v1910_v61 = vmul.f32 %v3706_v13, %v1901_v47  ;;  %v1911_v62 = vmul.f32 %v3708_v52, %v1902_v54 }
 0x1a4   : > { %3045 = vmatpush.msk.msra.mxu2 %vm659_vm9, %v1910_v61  ;;  %3047 = vmatpush.msk.msra.mxu3 %vm659_vm9, %v1911_v62 }
 0x1a5   : > { %3048 = vmatmul.msk.f32.vlgmr.msra.gmra.mxu3 %vm778_vm2, %v3039_v63  ;;  %3046 = vmatmul.msk.f32.vlgmr.msra.gmra.mxu2 %vm778_vm2, %v3039_v63 }
 0x1a7   : > { %v1918_v2 = vpop.permute.xlu0 %1917 }
 0x1a8   : > { %v1920_v1 = vpop.permute.xlu1 %1919 }
 0x1a9   : > { %v1921_v49 = vsel %vm1900_vm5, %v1918_v2, %v1920_v1  ;;  %v1922_v3 = vsel %vm1900_vm5, %v1920_v1, %v1918_v2 }
 0x1aa   : > { %v1923_v4 = vmul.f32 %v1921_v49, %v3706_v13  ;;  %v1924_v57 = vmul.f32 %v1922_v3, %v3708_v52 }
 0x1ac   : > { %3041 = vmatpush.msk.msra.mxu0 %vm659_vm9, %v1923_v4  ;;  %3043 = vmatpush.msk.msra.mxu1 %vm659_vm9, %v1924_v57 }
 0x1ad   : > { %3044 = vmatmul.msk.f32.vlgmr.msra.gmra.mxu1 %vm778_vm2, %v3040_v15  ;;  %3042 = vmatmul.msk.f32.vlgmr.msra.gmra.mxu0 %vm778_vm2, %v3040_v15 }
 0x1af   : > { %v874_v16 = vpop.f32.mrf.mxu3  ;;  %v854_v18 = vpop.f32.mrf.mxu2 }
 0x1b2   : > { %v825_v17 = vpop.f32.mrf.mxu1 }
 0x1b3   : > { %v805_v19 = vpop.f32.mrf.mxu0  ;;  %v875_v42 = vadd.f32 %v874_v16, %v825_v17 }
 0x1b4   : > { %v855_v46 = vadd.f32 %v854_v18, %v805_v19 }
 0x1b5   : > { %v879_v45 = vrot.slane %v875_v42, 4 }
 0x1b7   : > { %v1020_v20 = vpop.f32.mrf.mxu3  ;;  %v1000_v21 = vpop.f32.mrf.mxu2  ;;  %v880_v60 = vsel %vm659_vm9, %v855_v46, %v879_v45 }
 0x1ba   : > { %v971_v9 = vpop.f32.mrf.mxu1 }
 0x1bb   : > { %v951_v24 = vpop.f32.mrf.mxu0  ;;  %v1021_v43 = vadd.f32 %v1020_v20, %v971_v9 }
 0x1bc   : > { %v1001_v35 = vadd.f32 %v1000_v21, %v951_v24 }
 0x1bd   : > { %v1025_v48 = vrot.slane %v1021_v43, 4 }
 0x1bf   : > { %v1026_v54 = vsel %vm659_vm9, %v1001_v35, %v1025_v48 }
 0x1c0   : > { %v1028_v2 = vadd.f32 %v1026_v54, %v880_v60 }
 0x1c7   : > { %v1166_v26 = vpop.f32.mrf.mxu3  ;;  %v1146_v0 = vpop.f32.mrf.mxu2 }
 0x1c9   : > { %v1117_v27 = vpop.f32.mrf.mxu1  ;;  %v1097_v28 = vpop.f32.mrf.mxu0 }
 0x1ca   : > { %v1167_v50 = vadd.f32 %v1166_v26, %v1117_v27  ;;  %v1147_v62 = vadd.f32 %v1146_v0, %v1097_v28 }
 0x1cc   : > { %v1171_v61 = vrot.slane %v1167_v50, 4 }
 0x1ce   : > { %v1172_v49 = vsel %vm659_vm9, %v1147_v62, %v1171_v61 }
 0x1cf   : > { %v1174_v17 = vadd.f32 %v1172_v49, %v1028_v2 }
 0x1d7   : > { %v1312_v11 = vpop.f32.mrf.mxu3  ;;  %v1292_v58 = vpop.f32.mrf.mxu2 }
 0x1d9   : > { %v1263_v34 = vpop.f32.mrf.mxu1  ;;  %v1243_v38 = vpop.f32.mrf.mxu0 }
 0x1da   : > { %v1313_v63 = vadd.f32 %v1312_v11, %v1263_v34  ;;  %v1293_v4 = vadd.f32 %v1292_v58, %v1243_v38 }
 0x1dc   : > { %v1317_v3 = vrot.slane %v1313_v63, 4 }
 0x1de   : > { %v1318_v20 = vsel %vm659_vm9, %v1293_v4, %v1317_v3  ;;  %v2093_v4 = vld [vmem:[%s3933_s7] sm:$0xf] }
 0x1df   : > { %v1320_v11 = vadd.f32 %v1318_v20, %v1174_v17  ;;  %2096 = vperm.xlu1 %3118, %v2093_v4   ;;  %v3145_v17 = vmov 839922192  }
 0x1e0   : > { %v1441_v39 = vpop.f32.mrf.mxu3  ;;  %v1421_v41 = vpop.f32.mrf.mxu2 }
 0x1e1   : > { %v1390_v40 = vpop.f32.mrf.mxu1  ;;  %v1370_v32 = vpop.f32.mrf.mxu0 }
 0x1e2   : > { %v1442_v57 = vadd.f32 %v1441_v39, %v1390_v40  ;;  %v1422_v21 = vadd.f32 %v1421_v41, %v1370_v32 }
 0x1e4   : > { %v1446_v9 = vrot.slane %v1442_v57, 4 }
 0x1e6   : > { %v1447_v34 = vsel %vm659_vm9, %v1422_v21, %v1446_v9 }
 0x1f7   : > { %v1587_v33 = vpop.f32.mrf.mxu3  ;;  %v1567_v31 = vpop.f32.mrf.mxu2 }
 0x1f9   : > { %v1538_v29 = vpop.f32.mrf.mxu1  ;;  %v1518_v30 = vpop.f32.mrf.mxu0 }
 0x1fa   : > { %v1588_v15 = vadd.f32 %v1587_v33, %v1538_v29  ;;  %v1568_v0 = vadd.f32 %v1567_v31, %v1518_v30  ;;  %v1449_v33 = vadd.f32 %v1447_v34, %v1320_v11 }
 0x1fc   : > { %v1592_v27 = vrot.slane %v1588_v15, 4 }
 0x1fe   : > { %v1593_v38 = vsel %vm659_vm9, %v1568_v0, %v1592_v27 }
 0x1ff   : > { %v1595_v41 = vadd.f32 %v1593_v38, %v1449_v33 }
 0x207   : > { %v1733_v51 = vpop.f32.mrf.mxu3  ;;  %v1713_v47 = vpop.f32.mrf.mxu2 }
 0x209   : > { %v1684_v53 = vpop.f32.mrf.mxu1  ;;  %v1664_v1 = vpop.f32.mrf.mxu0 }
 0x20a   : > { %v1734_v24 = vadd.f32 %v1733_v51, %v1684_v53  ;;  %v1714_v58 = vadd.f32 %v1713_v47, %v1664_v1  ;;  %v3144_v1 = vmov 256.0  }
 0x20b   : > { %3120 = vrcp.f32 %v3144_v1 }
 0x20c   : > { %v1738_v42 = vrot.slane %v1734_v24, 4 }
 0x20e   : > { %v1739_v45 = vsel %vm659_vm9, %v1714_v58, %v1738_v42 }
 0x20f   : > { %v1741_v35 = vadd.f32 %v1739_v45, %v1595_v41 }
 0x211   : > { %v3121_v2 = vpop.eup %3120 }
 0x212   : > { %v2048_v49 = vmul.f32 256.0, %v3121_v2  ;;  %vm2052_vm8 = vweird.f32 %v3121_v2 }
 0x214   : > { %v2049_v3 = vsub.f32 1.0, %v2048_v49 }
 0x216   : > { %v2050_v57 = vmul.f32 %v3121_v2, %v2049_v3 }
 0x217   : > { %v1879_v16 = vpop.f32.mrf.mxu3  ;;  %v1859_v19 = vpop.f32.mrf.mxu2 }
 0x218   : > { %v2051_v15 = vadd.f32 %v3121_v2, %v2050_v57 }
 0x219   : > { %v1830_v18 = vpop.f32.mrf.mxu1  ;;  %v1810_v26 = vpop.f32.mrf.mxu0 }
 0x21a   : > { %v1880_v28 = vadd.f32 %v1879_v16, %v1830_v18  ;;  %v1860_v40 = vadd.f32 %v1859_v19, %v1810_v26  ;;  %v2104_v16 = vld [vmem:[%s3934_s8] sm:$0xf]  ;;  %v2057_v18 = vunpack.c.l.s4 %v3145_v17  ;;  %v3753_v19 = vsel %vm2052_vm8, %v3121_v2, %v2051_v15 }
 0x21b   : > { %2107 = vperm.xlu1 %3118, %v2104_v16  }
 0x21c   : > { %v1884_v39 = vrot.slane %v1880_v28, 4  ;;  %v3755_v20 = vunpack.c.0.s8 %v2057_v18 }
 0x21e   : > { %v1885_v31 = vsel %vm659_vm9, %v1860_v40, %v1884_v39 }
 0x21f   : > { %v1887_v51 = vadd.f32 %v1885_v31, %v1741_v35 }
 0x228   : > { %v2025_v29 = vpop.f32.mrf.mxu3  ;;  %v2005_v43 = vpop.f32.mrf.mxu2 }
 0x22a   : > { %v1976_v32 = vpop.f32.mrf.mxu1  ;;  %v1956_v46 = vpop.f32.mrf.mxu0 }
 0x22b   : > { %v2026_v30 = vadd.f32 %v2025_v29, %v1976_v32  ;;  %v2006_v48 = vadd.f32 %v2005_v43, %v1956_v46 }
 0x22d   : > { %v2030_v50 = vrot.slane %v2026_v30, 4 }
 0x22f   : > { %v2031_v60 = vsel %vm659_vm9, %v2006_v48, %v2030_v50 }
 0x230   : > { %v2033_v53 = vadd.f32 %v2031_v60, %v1887_v51 }
 0x232   : > { %2037 = vst [vmem:[#allocation1] ss:$2 sm:$0xff] %v2033_v53 }
 0x239   : > { %v2038_v47 = vld.sshfl [vmem:[#allocation1] sm:$0xff pattern:$0x75316420]  ;;  %v2039_v54 = vld.sshfl [vmem:[#allocation1 + $0x8] sm:$0xff pattern:$0x75316420] }
 0x23a   : > { %v2042_v61 = vsel %vm659_vm9, %v2038_v47, 0.0  ;;  %v2043_v62 = vsel %vm659_vm9, %v2039_v54, 0.0 }
 0x23b   : > { %v2044_v63 = vadd.f32 %v2043_v62, %v2042_v61 }
 0x23d   : > { %2045 = vadd.xlane.f32.xlu2 %v2044_v63 }
 0x251   : > { %v2097_v43 = vpop.permute.xlu1 %2096 }
 0x252   : > { %v2101_v35 = vperm.slane %v2097_v43, %v3755_v20 }
 0x28d   : > { %v2108_v30 = vpop.permute.xlu1 %2107 }
 0x28e   : > { %v2112_v51 = vperm.slane %v2108_v30, %v3755_v20 }
 0x2b0   : > { %v2046_v9 = vpop.xlane.xlu2 %2045 }
 0x2b1   : > { %v2054_v21 = vmul.f32 %v3753_v19, %v2046_v9 }
 0x2b3   : > { %v2059_v24 = vperm.slane %v2054_v21, %v3755_v20 }
 0x2b5   : > { %v2061_v26 = vsub.f32 %v2033_v53, %v2059_v24 }
 0x2b7   : > { %v2062_v27 = vmul.f32 %v2061_v26, %v2061_v26 }
 0x2b9   : > { %2064 = vst [vmem:[#allocation1] ss:$2 sm:$0xff] %v2062_v27 }
 0x2c0   : > { %v2065_v0 = vld.sshfl [vmem:[#allocation1] sm:$0xff pattern:$0x75316420]  ;;  %v2066_v28 = vld.sshfl [vmem:[#allocation1 + $0x8] sm:$0xff pattern:$0x75316420] }
 0x2c1   : > { %v2069_v11 = vsel %vm659_vm9, %v2065_v0, 0.0  ;;  %v2070_v34 = vsel %vm659_vm9, %v2066_v28, 0.0 }
 0x2c2   : > { %v2071_v42 = vadd.f32 %v2070_v34, %v2069_v11 }
 0x2c4   : > { %2072 = vadd.xlane.f32.xlu0 %v2071_v42 }
 0x337   : > { %v2073_v58 = vpop.xlane.xlu0 %2072 }
 0x338   : > { %v2074_v38 = vmul.f32 %v2073_v58, %v3753_v19  ;;  %v2136_v58 = vld [vmem:[%s3932_s6] sm:$0xf] }
 0x33a   : > { %v2075_v39 = vadd.f32 1e-05, %v2074_v38 }
 0x33c   : > { %3122 = vrsqrt.f32 %v2075_v39  ;;  %vm2082_vm7 = vweird.f32 %v2075_v39 }
 0x342   : > { %v3123_v40 = vpop.eup %3122 }
 0x343   : > { %v2077_v33 = vmul.f32 %v3123_v40, %v2075_v39  ;;  %vm2083_vm13 = vweird.f32 %v3123_v40 }
 0x344   : > { %vm2084_vm15 = vmor %vm2082_vm7, %vm2083_vm13 }
 0x345   : > { %v2078_v29 = vmul.f32 %v3123_v40, %v2077_v33 }
 0x347   : > { %v2079_v45 = vmul.f32 0.5, %v2078_v29  ;;  %v3053_v29 = vld [vmem:[%s3932_s6 + $0x4] sm:$0xf] }
 0x349   : > { %v2080_v41 = vsub.f32 1.5, %v2079_v45 }
 0x34b   : > { %v2081_v32 = vmul.f32 %v3123_v40, %v2080_v41 }
 0x34d   : > { %v2085_v46 = vsel %vm2084_vm15, %v3123_v40, %v2081_v32 }
 0x34e   : > { %v2090_v31 = vperm.slane %v2085_v46, %v3755_v20  ;;  %v3058_v46 = vld [vmem:[%s3932_s6 + $0x8] sm:$0xf] }
 0x350   : > { %v2092_v48 = vmul.f32 %v2090_v31, %v2061_v26 }
 0x352   : > { %v2103_v50 = vmul.f32 %v2101_v35, %v2092_v48 }
 0x354   : > { %v2114_v60 = vadd.f32 %v2112_v51, %v2103_v50 }
 0x356   : > { %vm2115_vm6 = vcmp.ge.f32.partialorder %v2114_v60, 0.0  ;;  %v2116_v53 = vmul.f32 0.01, %v2114_v60 }
 0x358   : > { %v2117_v47 = vsel %vm2115_vm6, %v2114_v60, %v2116_v53 }
 0x359   : > { %2122 = vst [vmem:[#allocation1] ss:$2 sm:$0xff] %v2117_v47  ;;  %v2416_v49 = vmul.f32 %v2117_v47, %v3330_v25 }
 0x360   : > { %v2123_v54 = vld.sshfl [vmem:[#allocation1] sm:$0xff pattern:$0x75316420]  ;;  %v2124_v61 = vld.sshfl [vmem:[#allocation1 + $0x8] sm:$0xff pattern:$0x75316420] }
 0x361   : > { %2127 = vrot.lane.b32.xlu1 %v2123_v54, %s3136_s20  ;;  %2195 = vst [vmem:[#allocation1] ss:$2 sm:$0xff] %v2117_v47 }
 0x368   : > { %v2197_v62 = vld.sshfl [vmem:[#allocation1 + $0x8] sm:$0xff pattern:$0x75316420]  ;;  %v2196_v63 = vld.sshfl [vmem:[#allocation1] sm:$0xff pattern:$0x75316420] }
 0x369   : > { %2129 = vrot.lane.b32.xlu1 %v2124_v61, %s3136_s20  ;;  %2202 = vrot.lane.b32.xlu2 %v2197_v62, %s3137_s21  ;;  %2269 = vst [vmem:[#allocation1] ss:$2 sm:$0xff] %v2117_v47  ;;  %v3063_v62 = vld [vmem:[%s3932_s6 + $0xc] sm:$0xf] }
 0x370   : > { %v2271_v1 = vld.sshfl [vmem:[#allocation1 + $0x8] sm:$0xff pattern:$0x75316420]  ;;  %v2270_v2 = vld.sshfl [vmem:[#allocation1] sm:$0xff pattern:$0x75316420] }
 0x371   : > { %2200 = vrot.lane.b32.xlu1 %v2196_v63, %s3137_s21  ;;  %2276 = vrot.lane.b32.xlu0 %v2271_v1, %s3138_s22  ;;  %2343 = vst [vmem:[#allocation1] ss:$2 sm:$0xff] %v2117_v47 }
 0x378   : > { %v2344_v3 = vld.sshfl [vmem:[#allocation1] sm:$0xff pattern:$0x75316420]  ;;  %v2345_v4 = vld.sshfl [vmem:[#allocation1 + $0x8] sm:$0xff pattern:$0x75316420] }
 0x379   : > { %2274 = vrot.lane.b32.xlu1 %v2270_v2, %s3138_s22  ;;  %2421 = vst [vmem:[#allocation1] ss:$2 sm:$0xff] %v2416_v49  ;;  %v3073_v2 = vld [vmem:[%s3932_s6 + $0x14] sm:$0xf]  ;;  %v3078_v49 = vld [vmem:[%s3932_s6 + $0x18] sm:$0xf] }
 0x380   : > { %v2422_v57 = vld.sshfl [vmem:[#allocation1] sm:$0xff pattern:$0x75316420]  ;;  %v2423_v15 = vld.sshfl [vmem:[#allocation1 + $0x8] sm:$0xff pattern:$0x75316420] }
 0x381   : > { %2348 = vrot.lane.b32.xlu1 %v2344_v3, %s3139_s23  ;;  %2480 = vst [vmem:[#allocation1] ss:$2 sm:$0xff] %v2117_v47 }
 0x388   : > { %v2482_v16 = vld.sshfl [vmem:[#allocation1 + $0x8] sm:$0xff pattern:$0x75316420]  ;;  %v2481_v17 = vld.sshfl [vmem:[#allocation1] sm:$0xff pattern:$0x75316420] }
 0x389   : > { %2350 = vrot.lane.b32.xlu1 %v2345_v4, %s3139_s23  ;;  %2487 = vrot.lane.b32.xlu0 %v2482_v16, %s3140_s24  ;;  %2554 = vst [vmem:[#allocation1] ss:$2 sm:$0xff] %v2117_v47  ;;  %v3083_v16 = vld [vmem:[%s3932_s6 + $0x1c] sm:$0xf] }
 0x38a   : > { %2485 = vrot.lane.b32.xlu2 %v2481_v17, %s3140_s24 }
 0x390   : > { %v2556_v25 = vld.sshfl [vmem:[#allocation1 + $0x8] sm:$0xff pattern:$0x75316420]  ;;  %v2555_v18 = vld.sshfl [vmem:[#allocation1] sm:$0xff pattern:$0x75316420] }
 0x391   : > { %2559 = vrot.lane.b32.xlu1 %v2555_v18, %s3141_s25  ;;  %2628 = vst [vmem:[#allocation1] ss:$2 sm:$0xff] %v2117_v47 }
 0x392   : > { %2561 = vrot.lane.b32.xlu2 %v2556_v25, %s3141_s25 }
 0x398   : > { %v2630_v9 = vld.sshfl [vmem:[#allocation1 + $0x8] sm:$0xff pattern:$0x75316420]  ;;  %v2629_v21 = vld.sshfl [vmem:[#allocation1] sm:$0xff pattern:$0x75316420] }
 0x399   : > { %2635 = vrot.lane.b32.xlu1 %v2630_v9, %s3142_s26  ;;  %2633 = vrot.lane.b32.xlu0 %v2629_v21, %s3142_s26  ;;  %2702 = vst [vmem:[#allocation1] ss:$2 sm:$0xff] %v2117_v47  ;;  %v3088_v21 = vld [vmem:[%s3932_s6 + $0x20] sm:$0xf] }
 0x3a0   : > { %v2704_v24 = vld.sshfl [vmem:[#allocation1 + $0x8] sm:$0xff pattern:$0x75316420]  ;;  %v2703_v26 = vld.sshfl [vmem:[#allocation1] sm:$0xff pattern:$0x75316420] }
 0x3a1   : > { %2709 = vrot.lane.b32.xlu0 %v2704_v24, %s3143_s29  ;;  %2707 = vrot.lane.b32.xlu2 %v2703_v26, %s3143_s29 }
 0x3c3   : > { %v2203_v38 = vpop.permute.xlu2 %2202 }
 0x3d3   : > { %v2128_v27 = vpop.permute.xlu1 %2127 }
 0x3db   : > { %v2130_v0 = vpop.permute.xlu1 %2129 }
 0x3dc   : > { %v2131_v28 = vsel %vm749_vm0, %v2128_v27, %v2130_v0  ;;  %v2132_v11 = vsel %vm749_vm0, %v2130_v0, %v2128_v27 }
 0x3dd   : > { %v2133_v34 = vmul.f32 %v2132_v11, %v3402_v7  ;;  %v2134_v42 = vmul.f32 %v2131_v28, %v3404_v5 }
 0x3df   : > { %3049 = vmatpush.msk.msrb.mxu0 %vm659_vm9, %v2133_v34  ;;  %3051 = vmatpush.msk.msrb.mxu1 %vm659_vm9, %v2134_v42 }
 0x3e0   : > { %3050 = vmatmul.msk.f32.vlgmr.msrb.gmra.mxu0 %vm778_vm2, %v2136_v58  ;;  %3052 = vmatmul.msk.f32.vlgmr.msrb.gmra.mxu1 %vm778_vm2, %v2136_v58 }
 0x3e3   : > { %v2201_v39 = vpop.permute.xlu1 %2200  ;;  %v2277_v43 = vpop.permute.xlu0 %2276 }
 0x3e4   : > { %v2204_v40 = vsel %vm895_vm11, %v2201_v39, %v2203_v38  ;;  %v2205_v7 = vsel %vm895_vm11, %v2203_v38, %v2201_v39  ;;  %vm3960_vm11 = vcmp.lt.s32.totalorder %v3391_v59, 15 }
 0x3e5   : > { %v2206_v5 = vmul.f32 %v2205_v7, %v3407_v6  ;;  %v2207_v33 = vmul.f32 %v2204_v40, %v3409_v8  ;;  %vm3961_vm0 = vmmov %vm3960_vm11 }
 0x3e7   : > { %3054 = vmatpush.msk.msrb.mxu2 %vm659_vm9, %v2206_v5  ;;  %3056 = vmatpush.msk.msrb.mxu3 %vm659_vm9, %v2207_v33 }
 0x3e8   : > { %3057 = vmatmul.msk.f32.vlgmr.msrb.gmra.mxu3 %vm778_vm2, %v3053_v29  ;;  %3055 = vmatmul.msk.f32.vlgmr.msrb.gmra.mxu2 %vm778_vm2, %v3053_v29 }
 0x3eb   : > { %v2275_v45 = vpop.permute.xlu1 %2274 }
 0x3ec   : > { %v2278_v41 = vsel %vm3960_vm11, %v2275_v45, %v2277_v43  ;;  %v2279_v6 = vsel %vm3961_vm0, %v2277_v43, %v2275_v45 }
 0x3ed   : > { %v2280_v8 = vmul.f32 %v2279_v6, %v3488_v55  ;;  %v2281_v32 = vmul.f32 %v2278_v41, %v3490_v56  ;;  %v3068_v55 = vld [vmem:[%s3932_s6 + $0x10] sm:$0xf]  ;;  %v2486_v56 = vpop.permute.xlu2 %2485 }
 0x3ef   : > { %3059 = vmatpush.msk.msra.mxu0 %vm659_vm9, %v2280_v8  ;;  %3061 = vmatpush.msk.msra.mxu1 %vm659_vm9, %v2281_v32 }
 0x3f0   : > { %3062 = vmatmul.msk.f32.vlgmr.msra.gmra.mxu1 %vm778_vm2, %v3058_v46  ;;  %3060 = vmatmul.msk.f32.vlgmr.msra.gmra.mxu0 %vm778_vm2, %v3058_v46 }
 0x3f1   : > { %3069 = vmatpush.msk.msrb.mxu0 %vm659_vm9, %v2422_v57  ;;  %3071 = vmatpush.msk.msrb.mxu1 %vm659_vm9, %v2423_v15 }
 0x3f3   : > { %v2349_v31 = vpop.permute.xlu1 %2348 }
 0x3f8   : > { %3072 = vmatmul.msk.f32.vlgmr.msrb.gmra.mxu1 %vm778_vm2, %v3068_v55  ;;  %3070 = vmatmul.msk.f32.vlgmr.msrb.gmra.mxu0 %vm778_vm2, %v3068_v55 }
 0x3fb   : > { %v2351_v30 = vpop.permute.xlu1 %2350  ;;  %v2488_v48 = vpop.permute.xlu0 %2487 }
 0x3fc   : > { %v2352_v35 = vsel %vm3962_vm1, %v2349_v31, %v2351_v30  ;;  %v2353_v50 = vsel %vm3963_vm14, %v2351_v30, %v2349_v31  ;;  %v2489_v51 = vsel %vm1462_vm4, %v2486_v56, %v2488_v48  ;;  %v2490_v60 = vsel %vm1462_vm4, %v2488_v48, %v2486_v56 }
 0x3fd   : > { %v2354_v53 = vmul.f32 %v2353_v50, %v3528_v22  ;;  %v2355_v47 = vmul.f32 %v2352_v35, %v3530_v23  ;;  %v2491_v54 = vmul.f32 %v2489_v51, %v3584_v44  ;;  %v2492_v61 = vmul.f32 %v2490_v60, %v3586_v10  ;;  %v2562_v22 = vpop.permute.xlu2 %2561 }
 0x3ff   : > { %3064 = vmatpush.msk.msra.mxu2 %vm659_vm9, %v2354_v53  ;;  %3066 = vmatpush.msk.msra.mxu3 %vm659_vm9, %v2355_v47 }
 0x400   : > { %3067 = vmatmul.msk.f32.vlgmr.msra.gmra.mxu3 %vm778_vm2, %v3063_v62  ;;  %3065 = vmatmul.msk.f32.vlgmr.msra.gmra.mxu2 %vm778_vm2, %v3063_v62 }
 0x401   : > { %3074 = vmatpush.msk.msrb.mxu2 %vm659_vm9, %v2491_v54  ;;  %3076 = vmatpush.msk.msrb.mxu3 %vm659_vm9, %v2492_v61 }
 0x403   : > { %v2560_v23 = vpop.permute.xlu1 %2559 }
 0x404   : > { %v2563_v44 = vsel %vm1608_vm3, %v2560_v23, %v2562_v22  ;;  %v2564_v10 = vsel %vm1608_vm3, %v2562_v22, %v2560_v23 }
 0x405   : > { %v2565_v63 = vmul.f32 %v2563_v44, %v3630_v12  ;;  %v2566_v1 = vmul.f32 %v2564_v10, %v3632_v14  ;;  %v2708_v17 = vpop.permute.xlu2 %2707 }
 0x407   : > { %3079 = vmatpush.msk.msra.mxu0 %vm659_vm9, %v2565_v63  ;;  %3081 = vmatpush.msk.msra.mxu1 %vm659_vm9, %v2566_v1 }
 0x408   : > { %3077 = vmatmul.msk.f32.vlgmr.msrb.gmra.mxu3 %vm778_vm2, %v3073_v2  ;;  %3082 = vmatmul.msk.f32.vlgmr.msra.gmra.mxu1 %vm778_vm2, %v3078_v49 }
 0x409   : > { %3075 = vmatmul.msk.f32.vlgmr.msrb.gmra.mxu2 %vm778_vm2, %v3073_v2  ;;  %3080 = vmatmul.msk.f32.vlgmr.msra.gmra.mxu0 %vm778_vm2, %v3078_v49 }
 0x40b   : > { %v2636_v12 = vpop.permute.xlu1 %2635  ;;  %v2634_v14 = vpop.permute.xlu0 %2633 }
 0x40c   : > { %v2637_v3 = vsel %vm1754_vm12, %v2634_v14, %v2636_v12  ;;  %v2638_v4 = vsel %vm1754_vm12, %v2636_v12, %v2634_v14  ;;  %v2825_v14 = vld [vmem:[%s3935_s9] sm:$0xf] }
 0x40d   : > { %v2639_v57 = vmul.f32 %v2637_v3, %v3668_v36  ;;  %v2640_v15 = vmul.f32 %v2638_v4, %v3670_v37  ;;  %2828 = vperm.xlu0 %3119, %v2825_v14   ;;  %v2836_v3 = vld [vmem:[%s3936_s10] sm:$0xf] }
 0x40f   : > { %3084 = vmatpush.msk.msra.mxu2 %vm659_vm9, %v2639_v57  ;;  %3086 = vmatpush.msk.msra.mxu3 %vm659_vm9, %v2640_v15 }
 0x410   : > { %3087 = vmatmul.msk.f32.vlgmr.msra.gmra.mxu3 %vm778_vm2, %v3083_v16 }
 0x411   : > { %3085 = vmatmul.msk.f32.vlgmr.msra.gmra.mxu2 %vm778_vm2, %v3083_v16 }
 0x413   : > { %v2710_v25 = vpop.permute.xlu0 %2709 }
 0x414   : > { %v2711_v18 = vsel %vm1900_vm5, %v2708_v17, %v2710_v25  ;;  %v2712_v36 = vsel %vm1900_vm5, %v2710_v25, %v2708_v17 }
 0x415   : > { %v2713_v37 = vmul.f32 %v2711_v18, %v3706_v13  ;;  %v2714_v9 = vmul.f32 %v2712_v36, %v3708_v52  ;;  %2839 = vperm.xlu0 %3119, %v2836_v3  }
 0x417   : > { %3089 = vmatpush.msk.msrb.mxu0 %vm659_vm9, %v2713_v37  ;;  %3091 = vmatpush.msk.msrb.mxu1 %vm659_vm9, %v2714_v9 }
 0x418   : > { %3092 = vmatmul.msk.f32.vlgmr.msrb.gmra.mxu1 %vm778_vm2, %v3088_v21  ;;  %3090 = vmatmul.msk.f32.vlgmr.msrb.gmra.mxu0 %vm778_vm2, %v3088_v21 }
 0x45d   : > { %v2183_v24 = vpop.f32.mrf.mxu1  ;;  %v2163_v26 = vpop.f32.mrf.mxu0 }
 0x45e   : > { %v2188_v28 = vrot.slane %v2183_v24, 4 }
 0x460   : > { %v2189_v42 = vsel %vm659_vm9, %v2163_v26, %v2188_v28 }
 0x46b   : > { %v2257_v0 = vpop.f32.mrf.mxu3  ;;  %v2237_v13 = vpop.f32.mrf.mxu2 }
 0x46c   : > { %v2262_v52 = vrot.slane %v2257_v0, 4 }
 0x46d   : > { %v2331_v59 = vpop.f32.mrf.mxu1  ;;  %v2311_v27 = vpop.f32.mrf.mxu0 }
 0x46e   : > { %v2263_v58 = vsel %vm659_vm9, %v2237_v13, %v2262_v52  ;;  %v2336_v38 = vrot.slane %v2331_v59, 4 }
 0x46f   : > { %v2265_v5 = vadd.f32 %v2263_v58, %v2189_v42 }
 0x470   : > { %v2337_v33 = vsel %vm659_vm9, %v2311_v27, %v2336_v38 }
 0x471   : > { %v2339_v45 = vadd.f32 %v2337_v33, %v2265_v5 }
 0x475   : > { %v2468_v11 = vpop.f32.mrf.mxu1  ;;  %v2448_v34 = vpop.f32.mrf.mxu0 }
 0x476   : > { %v2473_v43 = vrot.slane %v2468_v11, 4 }
 0x478   : > { %v2474_v46 = vsel %vm659_vm9, %v2448_v34, %v2473_v43 }
 0x47f   : > { %v2829_v13 = vpop.permute.xlu0 %2828 }
 0x483   : > { %v2405_v39 = vpop.f32.mrf.mxu3  ;;  %v2385_v7 = vpop.f32.mrf.mxu2 }
 0x484   : > { %v2410_v40 = vrot.slane %v2405_v39, 4 }
 0x485   : > { %v2616_v41 = vpop.f32.mrf.mxu1 }
 0x486   : > { %v2411_v29 = vsel %vm659_vm9, %v2385_v7, %v2410_v40  ;;  %v2596_v32 = vpop.f32.mrf.mxu0  ;;  %v2621_v30 = vrot.slane %v2616_v41, 4 }
 0x487   : > { %v2413_v6 = vadd.f32 %v2411_v29, %v2339_v45  ;;  %v2840_v58 = vpop.permute.xlu0 %2839 }
 0x488   : > { %v2622_v50 = vsel %vm659_vm9, %v2596_v32, %v2621_v30  ;;  %v2844_v40 = vperm.slane %v2840_v58, %v3755_v20 }
 0x489   : > { %v2476_v48 = vadd.f32 %v2474_v46, %v2413_v6 }
 0x48b   : > { %v2542_v8 = vpop.f32.mrf.mxu3 }
 0x48c   : > { %v2547_v31 = vrot.slane %v2542_v8, 4  ;;  %v2522_v55 = vpop.f32.mrf.mxu2 }
 0x48e   : > { %v2548_v56 = vsel %vm659_vm9, %v2522_v55, %v2547_v31 }
 0x48f   : > { %v2550_v35 = vadd.f32 %v2548_v56, %v2476_v48 }
 0x491   : > { %v2624_v47 = vadd.f32 %v2622_v50, %v2550_v35 }
 0x493   : > { %v2690_v51 = vpop.f32.mrf.mxu3 }
 0x494   : > { %v2695_v60 = vrot.slane %v2690_v51, 4  ;;  %v2670_v53 = vpop.f32.mrf.mxu2 }
 0x495   : > { %v2764_v54 = vpop.f32.mrf.mxu1  ;;  %v2744_v61 = vpop.f32.mrf.mxu0 }
 0x496   : > { %v2696_v62 = vsel %vm659_vm9, %v2670_v53, %v2695_v60  ;;  %v2769_v22 = vrot.slane %v2764_v54, 4 }
 0x497   : > { %v2698_v23 = vadd.f32 %v2696_v62, %v2624_v47 }
 0x498   : > { %v2770_v44 = vsel %vm659_vm9, %v2744_v61, %v2769_v22 }
 0x499   : > { %v2772_v10 = vadd.f32 %v2770_v44, %v2698_v23 }
 0x49b   : > { %2776 = vst [vmem:[#allocation1] ss:$2 sm:$0xff] %v2772_v10 }
 0x4a2   : > { %v2777_v63 = vld.sshfl [vmem:[#allocation1] sm:$0xff pattern:$0x75316420]  ;;  %v2778_v1 = vld.sshfl [vmem:[#allocation1 + $0x8] sm:$0xff pattern:$0x75316420] }
 0x4a3   : > { %v2781_v2 = vsel %vm659_vm9, %v2777_v63, 0.0  ;;  %v2782_v49 = vsel %vm659_vm9, %v2778_v1, 0.0 }
 0x4a4   : > { %v2783_v12 = vadd.f32 %v2782_v49, %v2781_v2 }
 0x4a6   : > { %2784 = vadd.xlane.f32.xlu1 %v2783_v12 }
 0x519   : > { %v2785_v4 = vpop.xlane.xlu1 %2784 }
 0x51a   : > { %v2786_v57 = vmul.f32 %v2785_v4, %v3753_v19 }
 0x51c   : > { %v2791_v15 = vperm.slane %v2786_v57, %v3755_v20 }
 0x51e   : > { %v2793_v16 = vsub.f32 %v2772_v10, %v2791_v15 }
 0x520   : > { %v2794_v17 = vmul.f32 %v2793_v16, %v2793_v16 }
 0x522   : > { %2796 = vst [vmem:[#allocation1] ss:$2 sm:$0xff] %v2794_v17 }
 0x529   : > { %v2797_v25 = vld.sshfl [vmem:[#allocation1] sm:$0xff pattern:$0x75316420]  ;;  %v2798_v18 = vld.sshfl [vmem:[#allocation1 + $0x8] sm:$0xff pattern:$0x75316420] }
 0x52a   : > { %v2801_v36 = vsel %vm659_vm9, %v2797_v25, 0.0  ;;  %v2802_v37 = vsel %vm659_vm9, %v2798_v18, 0.0 }
 0x52b   : > { %v2803_v9 = vadd.f32 %v2802_v37, %v2801_v36 }
 0x52d   : > { %2804 = vadd.xlane.f32.xlu2 %v2803_v9 }
 0x5a0   : > { %v2805_v21 = vpop.xlane.xlu2 %2804 }
 0x5a1   : > { %v2806_v24 = vmul.f32 %v2805_v21, %v3753_v19  ;;  %v2833_v19 = vperm.slane %v2829_v13, %v3755_v20 }
 0x5a3   : > { %v2807_v26 = vadd.f32 1e-05, %v2806_v24 }
 0x5a5   : > { %3124 = vrsqrt.f32 %v2807_v26  ;;  %vm2814_vm4 = vweird.f32 %v2807_v26 }
 0x5ab   : > { %v3125_v59 = vpop.eup %3124 }
 0x5ac   : > { %v2809_v27 = vmul.f32 %v3125_v59, %v2807_v26  ;;  %vm2815_vm2 = vweird.f32 %v3125_v59 }
 0x5ad   : > { %vm2816_vm3 = vmor %vm2814_vm4, %vm2815_vm2 }
 0x5ae   : > { %v2810_v0 = vmul.f32 %v3125_v59, %v2809_v27 }
 0x5b0   : > { %v2811_v28 = vmul.f32 0.5, %v2810_v0 }
 0x5b2   : > { %v2812_v52 = vsub.f32 1.5, %v2811_v28 }
 0x5b4   : > { %v2813_v11 = vmul.f32 %v3125_v59, %v2812_v52 }
 0x5b6   : > { %v2817_v34 = vsel %vm2816_vm3, %v3125_v59, %v2813_v11 }
 0x5b7   : > { %v2822_v42 = vperm.slane %v2817_v34, %v3755_v20 }
 0x5b9   : > { %v2824_v38 = vmul.f32 %v2822_v42, %v2793_v16 }
 0x5bb   : > { %v2835_v39 = vmul.f32 %v2833_v19, %v2824_v38 }
 0x5bd   : > { %v2846_v7 = vadd.f32 %v2844_v40, %v2835_v39 }
 0x5bf   : > { %vm2847_vm9 = vcmp.ge.f32.partialorder %v2846_v7, 0.0  ;;  %v2848_v5 = vmul.f32 0.01, %v2846_v7 }
 0x5c1   : > { %v2849_v33 = vsel %vm2847_vm9, %v2846_v7, %v2848_v5 }
 0x5c2   : > { %2850 = vst [vmem:[%s406_s27] sm:$0xff] %v2849_v33 }
 0x5c3 PF: > { %s21_s17 = sadd.s32 1, %s3132_s17  }
 0x5c4   : > { %p18_p4 = scmp.ge.s32.totalorder %s21_s17, 4  }
 0x5c6   :  { %20 = sbr.rel (!%p18_p4) target bundleno = 1 (0x1), region = 124 }

</bundles_post_ra>
